<compile_context>
chip_gen: v5e
topology: v5e:2x2
jax: 0.10.0
libtpu: 0.0.40
codegen_flags: <defaults>
</compile_context>

<pallas_src>
import functools
import numpy as np

import jax
import jax.numpy as jnp
from jax.experimental import pallas as pl
from jax.experimental.pallas import tpu as pltpu


def _layernorm(v, g, b, eps=1e-5):
    mu = jnp.mean(v, axis=-1, keepdims=True)
    var = jnp.mean(jnp.square(v - mu), axis=-1, keepdims=True)
    return (v - mu) * jax.lax.rsqrt(var + eps) * g + b


def _transformer_kernel(x_ref, bias_ref, pe_ref,
                        wqkv_ref, wo_ref, w1_ref, w2_ref,
                        bqkv_ref, vd_ref, b1_ref,
                        o_ref, *, n_heads):
    """Single invocation: PE add + all encoder layers on the whole batch."""
    B, S, D = x_ref.shape
    H = n_heads
    dh = D // H
    N = B * S
    n_layers = wqkv_ref.shape[0]

    # Residual stream kept as (N, D) f32; PE added once.
    x = (x_ref[...] + pe_ref[...][None, :, :]).reshape(N, D)
    bias = bias_ref[...]                       # (B, 1, S) additive key bias

    for l in range(n_layers):                  # static unroll over layers
        wqkv = wqkv_ref[l]                     # (D, 3D) bf16, scale folded in Wq
        wo = wo_ref[l]                         # (D, D)  bf16
        w1 = w1_ref[l]                         # (D, Dm) bf16
        w2 = w2_ref[l]                         # (Dm, D) bf16
        bqkv = bqkv_ref[l]                     # (1, 3D) f32 (bq scaled)
        vd = vd_ref[l]                         # (6, D)  f32
        bo, g1, be1, bb2, g2, be2 = (vd[j:j + 1, :] for j in range(6))
        bb1 = b1_ref[l]                        # (1, Dm) f32

        # ---- fused QKV projection (bf16 MXU operands, f32 accumulation)
        xb = x.astype(jnp.bfloat16)
        qkv = jnp.dot(xb, wqkv, preferred_element_type=jnp.float32) + bqkv
        q3 = qkv[:, 0:D].reshape(B, S, D)
        k3 = qkv[:, D:2 * D].reshape(B, S, D)
        v3 = qkv[:, 2 * D:3 * D].reshape(B, S, D)

        # ---- attention: per-head lane slices, no transposes; head merge folded
        #      into the output projection (accumulate ctx_h @ Wo[h*dh:(h+1)*dh]).
        acc = jnp.zeros((N, D), jnp.float32)
        for h in range(H):                     # static unroll over heads
            lo = h * dh
            qh = q3[:, :, lo:lo + dh].astype(jnp.bfloat16)   # (B, S, dh)
            kh = k3[:, :, lo:lo + dh].astype(jnp.bfloat16)
            vh = v3[:, :, lo:lo + dh].astype(jnp.bfloat16)
            s = jnp.einsum('bqd,bkd->bqk', qh, kh,
                           preferred_element_type=jnp.float32) + bias   # (B,S,S)
            m = jnp.max(s, axis=-1, keepdims=True)
            p = jnp.exp(s - m)
            p = p * pl.reciprocal(jnp.sum(p, axis=-1, keepdims=True), approx=True)
            ctx = jnp.einsum('bqk,bkd->bqd', p.astype(jnp.bfloat16), vh,
                             preferred_element_type=jnp.float32)        # (B,S,dh)
            acc = acc + jnp.dot(ctx.reshape(N, dh).astype(jnp.bfloat16),
                                wo[lo:lo + dh, :],
                                preferred_element_type=jnp.float32)

        # ---- residual + LayerNorm 1
        x1 = _layernorm(x + acc + bo, g1, be1)

        # ---- MLP: Linear -> GELU(tanh) -> Linear
        h1 = jnp.dot(x1.astype(jnp.bfloat16), w1,
                     preferred_element_type=jnp.float32) + bb1
        h1 = jax.nn.gelu(h1, approximate=True)
        h2 = jnp.dot(h1.astype(jnp.bfloat16), w2,
                     preferred_element_type=jnp.float32) + bb2

        # ---- residual + LayerNorm 2
        x = _layernorm(x1 + h2, g2, be2)

    # single output store per call
    o_ref[...] = x.reshape(B, S, D)


def make_fused_call(B, S, D, Dm, n_layers, n_heads):
    kernel = functools.partial(_transformer_kernel, n_heads=n_heads)
    in_specs = [
        pl.BlockSpec((B, S, D), lambda i: (0, 0, 0)),              # x
        pl.BlockSpec((B, 1, S), lambda i: (0, 0, 0)),              # additive attn bias
        pl.BlockSpec((S, D), lambda i: (0, 0)),                    # positional encoding
        pl.BlockSpec((n_layers, D, 3 * D), lambda i: (0, 0, 0)),   # Wqkv (bf16)
        pl.BlockSpec((n_layers, D, D), lambda i: (0, 0, 0)),       # Wo   (bf16)
        pl.BlockSpec((n_layers, D, Dm), lambda i: (0, 0, 0)),      # W1   (bf16)
        pl.BlockSpec((n_layers, Dm, D), lambda i: (0, 0, 0)),      # W2   (bf16)
        pl.BlockSpec((n_layers, 1, 3 * D), lambda i: (0, 0, 0)),   # bqkv (f32)
        pl.BlockSpec((n_layers, 6, D), lambda i: (0, 0, 0)),       # packed D-vectors
        pl.BlockSpec((n_layers, 1, Dm), lambda i: (0, 0, 0)),      # MLP hidden bias
    ]
    out_specs = pl.BlockSpec((B, S, D), lambda i: (0, 0, 0))

    return pl.pallas_call(
        kernel,
        out_shape=jax.ShapeDtypeStruct((B, S, D), jnp.float32),
        grid=(1,),
        in_specs=in_specs,
        out_specs=out_specs,
        compiler_params=pltpu.CompilerParams(
            dimension_semantics=("arbitrary",),
            vmem_limit_bytes=32 * 1024 * 1024),
    )


def sinusoidal_positional_encoding(S, D):
    pos = np.arange(S, dtype=np.float64)[:, None]
    div = np.exp(np.arange(0, D, 2, dtype=np.float64) * (-np.log(10000.0) / D))
    pe = np.zeros((S, D), dtype=np.float64)
    pe[:, 0::2] = np.sin(pos * div)
    pe[:, 1::2] = np.cos(pos * div)
    return jnp.asarray(pe, dtype=jnp.float32)


def init_block_params(key, D, Dm):
    ks = jax.random.split(key, 6)
    std = 0.02
    return dict(
        wq=jax.random.normal(ks[0], (D, D), jnp.float32) * std,
        bq=jnp.zeros((1, D), jnp.float32),
        wk=jax.random.normal(ks[1], (D, D), jnp.float32) * std,
        bk=jnp.zeros((1, D), jnp.float32),
        wv=jax.random.normal(ks[2], (D, D), jnp.float32) * std,
        bv=jnp.zeros((1, D), jnp.float32),
        wo=jax.random.normal(ks[3], (D, D), jnp.float32) * std,
        bo=jnp.zeros((1, D), jnp.float32),
        g1=jnp.ones((1, D), jnp.float32),
        be1=jnp.zeros((1, D), jnp.float32),
        w1=jax.random.normal(ks[4], (D, Dm), jnp.float32) * std,
        bb1=jnp.zeros((1, Dm), jnp.float32),
        w2=jax.random.normal(ks[5], (Dm, D), jnp.float32) * std,
        bb2=jnp.zeros((1, D), jnp.float32),
        g2=jnp.ones((1, D), jnp.float32),
        be2=jnp.zeros((1, D), jnp.float32),
    )


def stack_block_params(block_params, n_heads):
    """Stack per-layer params with a leading layer axis.

    - Wq|Wk|Wv concatenated along lanes into one (L, D, 3D) bf16 block.
    - 1/sqrt(dh) folded into Wq and bq.
    - Matmul weights bf16; bias / LayerNorm vectors stay f32.
    """
    D = block_params[0]["wq"].shape[0]
    dh = D // n_heads
    scale = jnp.float32(1.0 / np.sqrt(dh))

    wqkv = jnp.stack(
        [jnp.concatenate([p["wq"] * scale, p["wk"], p["wv"]], axis=1)
         for p in block_params]).astype(jnp.bfloat16)                   # (L, D, 3D)
    wo = jnp.stack([p["wo"] for p in block_params]).astype(jnp.bfloat16)  # (L, D, D)
    w1 = jnp.stack([p["w1"] for p in block_params]).astype(jnp.bfloat16)  # (L, D, Dm)
    w2 = jnp.stack([p["w2"] for p in block_params]).astype(jnp.bfloat16)  # (L, Dm, D)
    bqkv = jnp.stack(
        [jnp.concatenate([p["bq"] * scale, p["bk"], p["bv"]], axis=1)
         for p in block_params])                                        # (L, 1, 3D) f32
    vd = jnp.stack(
        [jnp.concatenate([p["bo"], p["g1"], p["be1"],
                          p["bb2"], p["g2"], p["be2"]], axis=0)
         for p in block_params])                                        # (L, 6, D) f32
    b1 = jnp.stack([p["bb1"] for p in block_params])                    # (L, 1, Dm) f32
    return wqkv, wo, w1, w2, bqkv, vd, b1


def transformer_snp_forward(x, mask, block_params, n_heads):
    B, S, D = x.shape
    L = len(block_params)
    Dm = block_params[0]["w1"].shape[1]
    assert D % n_heads == 0

    pe = sinusoidal_positional_encoding(S, D)
    # additive key-padding bias precomputed once (0 = valid, -1e9 = padded)
    bias = jnp.where(mask > 0.5, 0.0, -1e9).astype(jnp.float32)        # (B, 1, S)
    params = stack_block_params(block_params, n_heads)

    call = make_fused_call(B, S, D, Dm, L, n_heads)
    return call(x, bias, pe, *params)


# ------------------------- pure-JAX reference (sanity check) -----------------
def _reference_forward(x, mask, block_params, n_heads):
    B, S, D = x.shape
    H = n_heads
    dh = D // H
    bf = lambda t: t.astype(jnp.bfloat16)

    def dot(a, w):
        return jnp.dot(bf(a), bf(w), preferred_element_type=jnp.float32)

    x = x + sinusoidal_positional_encoding(S, D)[None]
    neg = jnp.where(mask > 0.5, 0.0, -1e9)                      # (B,1,S)

    for p in block_params:
        q = dot(x, p["wq"]) + p["bq"]
        k = dot(x, p["wk"]) + p["bk"]
        v = dot(x, p["wv"]) + p["bv"]
        heads = lambda t: t.reshape(B, S, H, dh).transpose(0, 2, 1, 3)
        qh, kh, vh = heads(q), heads(k), heads(v)
        s = jnp.einsum('bhqd,bhkd->bhqk', bf(qh), bf(kh),
                       preferred_element_type=jnp.float32) / np.sqrt(dh)
        s = s + neg[:, :, None, :]
        pa = jax.nn.softmax(s, axis=-1)
        ctx = jnp.einsum('bhqk,bhkd->bhqd', bf(pa), bf(vh),
                         preferred_element_type=jnp.float32)
        ctx = ctx.transpose(0, 2, 1, 3).reshape(B, S, D)
        attn = dot(ctx, p["wo"]) + p["bo"]
        x1 = _layernorm(x + attn, p["g1"], p["be1"])
        h1 = jax.nn.gelu(dot(x1, p["w1"]) + p["bb1"], approximate=True)
        h2 = dot(h1, p["w2"]) + p["bb2"]
        x = _layernorm(x1 + h2, p["g2"], p["be2"])
    return x


if __name__ == "__main__":
    # shapes consistent with the module:
    #   seq_length_out_cnn = 8, out_feature2 = 32,
    #   tuning_params = {n_heads: 4, mlp_factor: 4, n_blocks: 2, dropout: 0.0}
    B, S, D = 2, 8, 32
    n_heads, mlp_factor, n_blocks = 4, 4, 2
    Dm = mlp_factor * D

    key = jax.random.PRNGKey(0)
    kx, kp = jax.random.split(key)
    x = jax.random.normal(kx, (B, S, D), jnp.float32)

    # key-padding mask: batch 1 has its last 2 positions padded (1=valid, 0=pad)
    mask = np.ones((B, 1, S), dtype=np.float32)
    mask[1, 0, S - 2:] = 0.0
    mask = jnp.asarray(mask)

    block_params = [init_block_params(k, D, Dm)
                    for k in jax.random.split(kp, n_blocks)]

    out = transformer_snp_forward(x, mask, block_params, n_heads)
    out = jax.block_until_ready(out)

    assert out.shape == (B, S, D)
    assert bool(jnp.all(jnp.isfinite(out)))

    ref = _reference_forward(x, mask, block_params, n_heads)
    max_diff = float(jnp.max(jnp.abs(out - ref)))
    assert max_diff < 0.1, f"kernel deviates from reference: {max_diff}"

    print("KERNEL_OK")
</pallas_src>

<mosaic_0001>
module attributes {stable_mosaic.version = 11 : i64} {
  func.func @_transformer_kernel(%arg0: i32, %arg1: memref<2x8x32xf32, #tpu.memory_space<vmem>>, %arg2: memref<2x1x8xf32, #tpu.memory_space<vmem>>, %arg3: memref<8x32xf32, #tpu.memory_space<vmem>>, %arg4: memref<2x32x96xbf16, #tpu.memory_space<vmem>>, %arg5: memref<2x32x32xbf16, #tpu.memory_space<vmem>>, %arg6: memref<2x32x128xbf16, #tpu.memory_space<vmem>>, %arg7: memref<2x128x32xbf16, #tpu.memory_space<vmem>>, %arg8: memref<2x1x96xf32, #tpu.memory_space<vmem>>, %arg9: memref<2x6x32xf32, #tpu.memory_space<vmem>>, %arg10: memref<2x1x128xf32, #tpu.memory_space<vmem>>, %arg11: memref<2x8x32xf32, #tpu.memory_space<vmem>>) attributes {dimension_semantics = [#tpu.dimension_semantics<arbitrary>], iteration_bounds = array<i64: 1>, scalar_prefetch = 0 : i64, scratch_operands = 0 : i64, tpu.core_type = #tpu.core_type<tc>, window_params = [{pipeline_mode = #tpu.pipeline_mode<synchronous>, transform_indices = @transform_0, window_bounds = array<i64: 2, 8, 32>}, {pipeline_mode = #tpu.pipeline_mode<synchronous>, transform_indices = @transform_1, window_bounds = array<i64: 2, 1, 8>}, {pipeline_mode = #tpu.pipeline_mode<synchronous>, transform_indices = @transform_2, window_bounds = array<i64: 8, 32>}, {pipeline_mode = #tpu.pipeline_mode<synchronous>, transform_indices = @transform_3, window_bounds = array<i64: 2, 32, 96>}, {pipeline_mode = #tpu.pipeline_mode<synchronous>, transform_indices = @transform_4, window_bounds = array<i64: 2, 32, 32>}, {pipeline_mode = #tpu.pipeline_mode<synchronous>, transform_indices = @transform_5, window_bounds = array<i64: 2, 32, 128>}, {pipeline_mode = #tpu.pipeline_mode<synchronous>, transform_indices = @transform_6, window_bounds = array<i64: 2, 128, 32>}, {pipeline_mode = #tpu.pipeline_mode<synchronous>, transform_indices = @transform_7, window_bounds = array<i64: 2, 1, 96>}, {pipeline_mode = #tpu.pipeline_mode<synchronous>, transform_indices = @transform_8, window_bounds = array<i64: 2, 6, 32>}, {pipeline_mode = #tpu.pipeline_mode<synchronous>, transform_indices = @transform_9, window_bounds = array<i64: 2, 1, 128>}, {pipeline_mode = #tpu.pipeline_mode<synchronous>, transform_indices = @transform_10, window_bounds = array<i64: 2, 8, 32>}]} {
    %c0 = arith.constant 0 : index
    %c0_0 = arith.constant 0 : index
    %c0_1 = arith.constant 0 : index
    %0 = vector.load %arg1[%c0, %c0_0, %c0_1] : memref<2x8x32xf32, #tpu.memory_space<vmem>>, vector<2x8x32xf32>
    %c0_2 = arith.constant 0 : index
    %c0_3 = arith.constant 0 : index
    %1 = vector.load %arg3[%c0_2, %c0_3] : memref<8x32xf32, #tpu.memory_space<vmem>>, vector<8x32xf32>
    %2 = vector.shape_cast %1 : vector<8x32xf32> to vector<1x8x32xf32>
    %3 = vector.broadcast %2 : vector<1x8x32xf32> to vector<2x8x32xf32>
    %4 = arith.addf %0, %3 : vector<2x8x32xf32>
    %5 = vector.shape_cast %4 : vector<2x8x32xf32> to vector<16x32xf32>
    %c0_4 = arith.constant 0 : index
    %c0_5 = arith.constant 0 : index
    %c0_6 = arith.constant 0 : index
    %6 = vector.load %arg2[%c0_4, %c0_5, %c0_6] : memref<2x1x8xf32, #tpu.memory_space<vmem>>, vector<2x1x8xf32>
    %c0_7 = arith.constant 0 : index
    %c0_8 = arith.constant 0 : index
    %c0_9 = arith.constant 0 : index
    %7 = vector.load %arg4[%c0_7, %c0_8, %c0_9] : memref<2x32x96xbf16, #tpu.memory_space<vmem>>, vector<1x32x96xbf16>
    %8 = vector.shape_cast %7 : vector<1x32x96xbf16> to vector<32x96xbf16>
    %c0_10 = arith.constant 0 : index
    %c0_11 = arith.constant 0 : index
    %c0_12 = arith.constant 0 : index
    %9 = vector.load %arg5[%c0_10, %c0_11, %c0_12] : memref<2x32x32xbf16, #tpu.memory_space<vmem>>, vector<1x32x32xbf16>
    %10 = vector.shape_cast %9 : vector<1x32x32xbf16> to vector<32x32xbf16>
    %c0_13 = arith.constant 0 : index
    %c0_14 = arith.constant 0 : index
    %c0_15 = arith.constant 0 : index
    %11 = vector.load %arg6[%c0_13, %c0_14, %c0_15] : memref<2x32x128xbf16, #tpu.memory_space<vmem>>, vector<1x32x128xbf16>
    %12 = vector.shape_cast %11 : vector<1x32x128xbf16> to vector<32x128xbf16>
    %c0_16 = arith.constant 0 : index
    %c0_17 = arith.constant 0 : index
    %c0_18 = arith.constant 0 : index
    %13 = vector.load %arg7[%c0_16, %c0_17, %c0_18] : memref<2x128x32xbf16, #tpu.memory_space<vmem>>, vector<1x128x32xbf16>
    %14 = vector.shape_cast %13 : vector<1x128x32xbf16> to vector<128x32xbf16>
    %c0_19 = arith.constant 0 : index
    %c0_20 = arith.constant 0 : index
    %c0_21 = arith.constant 0 : index
    %15 = vector.load %arg8[%c0_19, %c0_20, %c0_21] : memref<2x1x96xf32, #tpu.memory_space<vmem>>, vector<1x1x96xf32>
    %16 = vector.shape_cast %15 : vector<1x1x96xf32> to vector<1x96xf32>
    %c0_22 = arith.constant 0 : index
    %c0_23 = arith.constant 0 : index
    %c0_24 = arith.constant 0 : index
    %17 = vector.load %arg9[%c0_22, %c0_23, %c0_24] : memref<2x6x32xf32, #tpu.memory_space<vmem>>, vector<1x6x32xf32>
    %18 = vector.shape_cast %17 : vector<1x6x32xf32> to vector<6x32xf32>
    %19 = vector.extract_strided_slice %18 {offsets = [0, 0], sizes = [1, 32], strides = [1, 1]} : vector<6x32xf32> to vector<1x32xf32>
    %20 = vector.extract_strided_slice %18 {offsets = [1, 0], sizes = [1, 32], strides = [1, 1]} : vector<6x32xf32> to vector<1x32xf32>
    %21 = vector.extract_strided_slice %18 {offsets = [2, 0], sizes = [1, 32], strides = [1, 1]} : vector<6x32xf32> to vector<1x32xf32>
    %22 = vector.extract_strided_slice %18 {offsets = [3, 0], sizes = [1, 32], strides = [1, 1]} : vector<6x32xf32> to vector<1x32xf32>
    %23 = vector.extract_strided_slice %18 {offsets = [4, 0], sizes = [1, 32], strides = [1, 1]} : vector<6x32xf32> to vector<1x32xf32>
    %24 = vector.extract_strided_slice %18 {offsets = [5, 0], sizes = [1, 32], strides = [1, 1]} : vector<6x32xf32> to vector<1x32xf32>
    %c0_25 = arith.constant 0 : index
    %c0_26 = arith.constant 0 : index
    %c0_27 = arith.constant 0 : index
    %25 = vector.load %arg10[%c0_25, %c0_26, %c0_27] : memref<2x1x128xf32, #tpu.memory_space<vmem>>, vector<1x1x128xf32>
    %26 = vector.shape_cast %25 : vector<1x1x128xf32> to vector<1x128xf32>
    %27 = arith.truncf %5 : vector<16x32xf32> to vector<16x32xbf16>
    %cst = arith.constant dense<0.000000e+00> : vector<16x96xf32>
    %28 = tpu.matmul %27, %8, %cst {dimension_numbers = #tpu.dot_dimension_numbers<[1], [0], [0], [1], [0, 0, 1, 1], [], []>} : vector<16x32xbf16>, vector<32x96xbf16>, vector<16x96xf32> -> vector<16x96xf32>
    %29 = vector.broadcast %16 : vector<1x96xf32> to vector<16x96xf32>
    %30 = arith.addf %28, %29 : vector<16x96xf32>
    %31 = vector.extract_strided_slice %30 {offsets = [0, 0], sizes = [16, 32], strides = [1, 1]} : vector<16x96xf32> to vector<16x32xf32>
    %32 = vector.shape_cast %31 : vector<16x32xf32> to vector<2x8x32xf32>
    %33 = vector.extract_strided_slice %30 {offsets = [0, 32], sizes = [16, 32], strides = [1, 1]} : vector<16x96xf32> to vector<16x32xf32>
    %34 = vector.shape_cast %33 : vector<16x32xf32> to vector<2x8x32xf32>
    %35 = vector.extract_strided_slice %30 {offsets = [0, 64], sizes = [16, 32], strides = [1, 1]} : vector<16x96xf32> to vector<16x32xf32>
    %36 = vector.shape_cast %35 : vector<16x32xf32> to vector<2x8x32xf32>
    %cst_28 = arith.constant 0.000000e+00 : f32
    %37 = vector.broadcast %cst_28 : f32 to vector<16x32xf32>
    %38 = vector.extract_strided_slice %32 {offsets = [0, 0, 0], sizes = [2, 8, 8], strides = [1, 1, 1]} : vector<2x8x32xf32> to vector<2x8x8xf32>
    %39 = arith.truncf %38 : vector<2x8x8xf32> to vector<2x8x8xbf16>
    %40 = vector.extract_strided_slice %34 {offsets = [0, 0, 0], sizes = [2, 8, 8], strides = [1, 1, 1]} : vector<2x8x32xf32> to vector<2x8x8xf32>
    %41 = arith.truncf %40 : vector<2x8x8xf32> to vector<2x8x8xbf16>
    %42 = vector.extract_strided_slice %36 {offsets = [0, 0, 0], sizes = [2, 8, 8], strides = [1, 1, 1]} : vector<2x8x32xf32> to vector<2x8x8xf32>
    %43 = arith.truncf %42 : vector<2x8x8xf32> to vector<2x8x8xbf16>
    "tpu.trace_start"() <{level = 10 : i32, message = "bqd,bkd->bqk"}> : () -> ()
    %cst_29 = arith.constant dense<0.000000e+00> : vector<2x8x8xf32>
    %44 = tpu.matmul %39, %41, %cst_29 {dimension_numbers = #tpu.dot_dimension_numbers<[2], [2], [1], [1], [0, 0, 0, 1, 1, 1], [0], [0]>} : vector<2x8x8xbf16>, vector<2x8x8xbf16>, vector<2x8x8xf32> -> vector<2x8x8xf32>
    "tpu.trace_stop"() : () -> ()
    %45 = vector.broadcast %6 : vector<2x1x8xf32> to vector<2x8x8xf32>
    %46 = arith.addf %44, %45 : vector<2x8x8xf32>
    %cst_30 = arith.constant dense<0xFF800000> : vector<2x8xf32>
    %47 = vector.multi_reduction <maximumf>, %46, %cst_30 [2] : vector<2x8x8xf32> to vector<2x8xf32>
    %48 = vector.shape_cast %47 : vector<2x8xf32> to vector<2x8x1xf32>
    %49 = vector.broadcast %48 : vector<2x8x1xf32> to vector<2x8x8xf32>
    %50 = arith.subf %46, %49 : vector<2x8x8xf32>
    %51 = math.exp %50 : vector<2x8x8xf32>
    %cst_31 = arith.constant dense<0.000000e+00> : vector<2x8xf32>
    %52 = vector.multi_reduction <add>, %51, %cst_31 [2] : vector<2x8x8xf32> to vector<2x8xf32>
    %53 = vector.shape_cast %52 : vector<2x8xf32> to vector<2x8x1xf32>
    %54 = tpu.reciprocal %53 {approx = true} : vector<2x8x1xf32> -> vector<2x8x1xf32>
    %55 = vector.broadcast %54 : vector<2x8x1xf32> to vector<2x8x8xf32>
    %56 = arith.mulf %51, %55 : vector<2x8x8xf32>
    %57 = arith.truncf %56 : vector<2x8x8xf32> to vector<2x8x8xbf16>
    "tpu.trace_start"() <{level = 10 : i32, message = "bqk,bkd->bqd"}> : () -> ()
    %cst_32 = arith.constant dense<0.000000e+00> : vector<2x8x8xf32>
    %58 = tpu.matmul %57, %43, %cst_32 {dimension_numbers = #tpu.dot_dimension_numbers<[2], [1], [1], [2], [0, 0, 0, 1, 1, 2], [0], [0]>} : vector<2x8x8xbf16>, vector<2x8x8xbf16>, vector<2x8x8xf32> -> vector<2x8x8xf32>
    "tpu.trace_stop"() : () -> ()
    %59 = vector.shape_cast %58 : vector<2x8x8xf32> to vector<16x8xf32>
    %60 = arith.truncf %59 : vector<16x8xf32> to vector<16x8xbf16>
    %61 = vector.extract_strided_slice %10 {offsets = [0, 0], sizes = [8, 32], strides = [1, 1]} : vector<32x32xbf16> to vector<8x32xbf16>
    %cst_33 = arith.constant dense<0.000000e+00> : vector<16x32xf32>
    %62 = tpu.matmul %60, %61, %cst_33 {dimension_numbers = #tpu.dot_dimension_numbers<[1], [0], [0], [1], [0, 0, 1, 1], [], []>} : vector<16x8xbf16>, vector<8x32xbf16>, vector<16x32xf32> -> vector<16x32xf32>
    %63 = arith.addf %37, %62 : vector<16x32xf32>
    %64 = vector.extract_strided_slice %32 {offsets = [0, 0, 8], sizes = [2, 8, 8], strides = [1, 1, 1]} : vector<2x8x32xf32> to vector<2x8x8xf32>
    %65 = arith.truncf %64 : vector<2x8x8xf32> to vector<2x8x8xbf16>
    %66 = vector.extract_strided_slice %34 {offsets = [0, 0, 8], sizes = [2, 8, 8], strides = [1, 1, 1]} : vector<2x8x32xf32> to vector<2x8x8xf32>
    %67 = arith.truncf %66 : vector<2x8x8xf32> to vector<2x8x8xbf16>
    %68 = vector.extract_strided_slice %36 {offsets = [0, 0, 8], sizes = [2, 8, 8], strides = [1, 1, 1]} : vector<2x8x32xf32> to vector<2x8x8xf32>
    %69 = arith.truncf %68 : vector<2x8x8xf32> to vector<2x8x8xbf16>
    "tpu.trace_start"() <{level = 10 : i32, message = "bqd,bkd->bqk"}> : () -> ()
    %cst_34 = arith.constant dense<0.000000e+00> : vector<2x8x8xf32>
    %70 = tpu.matmul %65, %67, %cst_34 {dimension_numbers = #tpu.dot_dimension_numbers<[2], [2], [1], [1], [0, 0, 0, 1, 1, 1], [0], [0]>} : vector<2x8x8xbf16>, vector<2x8x8xbf16>, vector<2x8x8xf32> -> vector<2x8x8xf32>
    "tpu.trace_stop"() : () -> ()
    %71 = vector.broadcast %6 : vector<2x1x8xf32> to vector<2x8x8xf32>
    %72 = arith.addf %70, %71 : vector<2x8x8xf32>
    %cst_35 = arith.constant dense<0xFF800000> : vector<2x8xf32>
    %73 = vector.multi_reduction <maximumf>, %72, %cst_35 [2] : vector<2x8x8xf32> to vector<2x8xf32>
    %74 = vector.shape_cast %73 : vector<2x8xf32> to vector<2x8x1xf32>
    %75 = vector.broadcast %74 : vector<2x8x1xf32> to vector<2x8x8xf32>
    %76 = arith.subf %72, %75 : vector<2x8x8xf32>
    %77 = math.exp %76 : vector<2x8x8xf32>
    %cst_36 = arith.constant dense<0.000000e+00> : vector<2x8xf32>
    %78 = vector.multi_reduction <add>, %77, %cst_36 [2] : vector<2x8x8xf32> to vector<2x8xf32>
    %79 = vector.shape_cast %78 : vector<2x8xf32> to vector<2x8x1xf32>
    %80 = tpu.reciprocal %79 {approx = true} : vector<2x8x1xf32> -> vector<2x8x1xf32>
    %81 = vector.broadcast %80 : vector<2x8x1xf32> to vector<2x8x8xf32>
    %82 = arith.mulf %77, %81 : vector<2x8x8xf32>
    %83 = arith.truncf %82 : vector<2x8x8xf32> to vector<2x8x8xbf16>
    "tpu.trace_start"() <{level = 10 : i32, message = "bqk,bkd->bqd"}> : () -> ()
    %cst_37 = arith.constant dense<0.000000e+00> : vector<2x8x8xf32>
    %84 = tpu.matmul %83, %69, %cst_37 {dimension_numbers = #tpu.dot_dimension_numbers<[2], [1], [1], [2], [0, 0, 0, 1, 1, 2], [0], [0]>} : vector<2x8x8xbf16>, vector<2x8x8xbf16>, vector<2x8x8xf32> -> vector<2x8x8xf32>
    "tpu.trace_stop"() : () -> ()
    %85 = vector.shape_cast %84 : vector<2x8x8xf32> to vector<16x8xf32>
    %86 = arith.truncf %85 : vector<16x8xf32> to vector<16x8xbf16>
    %87 = vector.extract_strided_slice %10 {offsets = [8, 0], sizes = [8, 32], strides = [1, 1]} : vector<32x32xbf16> to vector<8x32xbf16>
    %cst_38 = arith.constant dense<0.000000e+00> : vector<16x32xf32>
    %88 = tpu.matmul %86, %87, %cst_38 {dimension_numbers = #tpu.dot_dimension_numbers<[1], [0], [0], [1], [0, 0, 1, 1], [], []>} : vector<16x8xbf16>, vector<8x32xbf16>, vector<16x32xf32> -> vector<16x32xf32>
    %89 = arith.addf %63, %88 : vector<16x32xf32>
    %90 = vector.extract_strided_slice %32 {offsets = [0, 0, 16], sizes = [2, 8, 8], strides = [1, 1, 1]} : vector<2x8x32xf32> to vector<2x8x8xf32>
    %91 = arith.truncf %90 : vector<2x8x8xf32> to vector<2x8x8xbf16>
    %92 = vector.extract_strided_slice %34 {offsets = [0, 0, 16], sizes = [2, 8, 8], strides = [1, 1, 1]} : vector<2x8x32xf32> to vector<2x8x8xf32>
    %93 = arith.truncf %92 : vector<2x8x8xf32> to vector<2x8x8xbf16>
    %94 = vector.extract_strided_slice %36 {offsets = [0, 0, 16], sizes = [2, 8, 8], strides = [1, 1, 1]} : vector<2x8x32xf32> to vector<2x8x8xf32>
    %95 = arith.truncf %94 : vector<2x8x8xf32> to vector<2x8x8xbf16>
    "tpu.trace_start"() <{level = 10 : i32, message = "bqd,bkd->bqk"}> : () -> ()
    %cst_39 = arith.constant dense<0.000000e+00> : vector<2x8x8xf32>
    %96 = tpu.matmul %91, %93, %cst_39 {dimension_numbers = #tpu.dot_dimension_numbers<[2], [2], [1], [1], [0, 0, 0, 1, 1, 1], [0], [0]>} : vector<2x8x8xbf16>, vector<2x8x8xbf16>, vector<2x8x8xf32> -> vector<2x8x8xf32>
    "tpu.trace_stop"() : () -> ()
    %97 = vector.broadcast %6 : vector<2x1x8xf32> to vector<2x8x8xf32>
    %98 = arith.addf %96, %97 : vector<2x8x8xf32>
    %cst_40 = arith.constant dense<0xFF800000> : vector<2x8xf32>
    %99 = vector.multi_reduction <maximumf>, %98, %cst_40 [2] : vector<2x8x8xf32> to vector<2x8xf32>
    %100 = vector.shape_cast %99 : vector<2x8xf32> to vector<2x8x1xf32>
    %101 = vector.broadcast %100 : vector<2x8x1xf32> to vector<2x8x8xf32>
    %102 = arith.subf %98, %101 : vector<2x8x8xf32>
    %103 = math.exp %102 : vector<2x8x8xf32>
    %cst_41 = arith.constant dense<0.000000e+00> : vector<2x8xf32>
    %104 = vector.multi_reduction <add>, %103, %cst_41 [2] : vector<2x8x8xf32> to vector<2x8xf32>
    %105 = vector.shape_cast %104 : vector<2x8xf32> to vector<2x8x1xf32>
    %106 = tpu.reciprocal %105 {approx = true} : vector<2x8x1xf32> -> vector<2x8x1xf32>
    %107 = vector.broadcast %106 : vector<2x8x1xf32> to vector<2x8x8xf32>
    %108 = arith.mulf %103, %107 : vector<2x8x8xf32>
    %109 = arith.truncf %108 : vector<2x8x8xf32> to vector<2x8x8xbf16>
    "tpu.trace_start"() <{level = 10 : i32, message = "bqk,bkd->bqd"}> : () -> ()
    %cst_42 = arith.constant dense<0.000000e+00> : vector<2x8x8xf32>
    %110 = tpu.matmul %109, %95, %cst_42 {dimension_numbers = #tpu.dot_dimension_numbers<[2], [1], [1], [2], [0, 0, 0, 1, 1, 2], [0], [0]>} : vector<2x8x8xbf16>, vector<2x8x8xbf16>, vector<2x8x8xf32> -> vector<2x8x8xf32>
    "tpu.trace_stop"() : () -> ()
    %111 = vector.shape_cast %110 : vector<2x8x8xf32> to vector<16x8xf32>
    %112 = arith.truncf %111 : vector<16x8xf32> to vector<16x8xbf16>
    %113 = vector.extract_strided_slice %10 {offsets = [16, 0], sizes = [8, 32], strides = [1, 1]} : vector<32x32xbf16> to vector<8x32xbf16>
    %cst_43 = arith.constant dense<0.000000e+00> : vector<16x32xf32>
    %114 = tpu.matmul %112, %113, %cst_43 {dimension_numbers = #tpu.dot_dimension_numbers<[1], [0], [0], [1], [0, 0, 1, 1], [], []>} : vector<16x8xbf16>, vector<8x32xbf16>, vector<16x32xf32> -> vector<16x32xf32>
    %115 = arith.addf %89, %114 : vector<16x32xf32>
    %116 = vector.extract_strided_slice %32 {offsets = [0, 0, 24], sizes = [2, 8, 8], strides = [1, 1, 1]} : vector<2x8x32xf32> to vector<2x8x8xf32>
    %117 = arith.truncf %116 : vector<2x8x8xf32> to vector<2x8x8xbf16>
    %118 = vector.extract_strided_slice %34 {offsets = [0, 0, 24], sizes = [2, 8, 8], strides = [1, 1, 1]} : vector<2x8x32xf32> to vector<2x8x8xf32>
    %119 = arith.truncf %118 : vector<2x8x8xf32> to vector<2x8x8xbf16>
    %120 = vector.extract_strided_slice %36 {offsets = [0, 0, 24], sizes = [2, 8, 8], strides = [1, 1, 1]} : vector<2x8x32xf32> to vector<2x8x8xf32>
    %121 = arith.truncf %120 : vector<2x8x8xf32> to vector<2x8x8xbf16>
    "tpu.trace_start"() <{level = 10 : i32, message = "bqd,bkd->bqk"}> : () -> ()
    %cst_44 = arith.constant dense<0.000000e+00> : vector<2x8x8xf32>
    %122 = tpu.matmul %117, %119, %cst_44 {dimension_numbers = #tpu.dot_dimension_numbers<[2], [2], [1], [1], [0, 0, 0, 1, 1, 1], [0], [0]>} : vector<2x8x8xbf16>, vector<2x8x8xbf16>, vector<2x8x8xf32> -> vector<2x8x8xf32>
    "tpu.trace_stop"() : () -> ()
    %123 = vector.broadcast %6 : vector<2x1x8xf32> to vector<2x8x8xf32>
    %124 = arith.addf %122, %123 : vector<2x8x8xf32>
    %cst_45 = arith.constant dense<0xFF800000> : vector<2x8xf32>
    %125 = vector.multi_reduction <maximumf>, %124, %cst_45 [2] : vector<2x8x8xf32> to vector<2x8xf32>
    %126 = vector.shape_cast %125 : vector<2x8xf32> to vector<2x8x1xf32>
    %127 = vector.broadcast %126 : vector<2x8x1xf32> to vector<2x8x8xf32>
    %128 = arith.subf %124, %127 : vector<2x8x8xf32>
    %129 = math.exp %128 : vector<2x8x8xf32>
    %cst_46 = arith.constant dense<0.000000e+00> : vector<2x8xf32>
    %130 = vector.multi_reduction <add>, %129, %cst_46 [2] : vector<2x8x8xf32> to vector<2x8xf32>
    %131 = vector.shape_cast %130 : vector<2x8xf32> to vector<2x8x1xf32>
    %132 = tpu.reciprocal %131 {approx = true} : vector<2x8x1xf32> -> vector<2x8x1xf32>
    %133 = vector.broadcast %132 : vector<2x8x1xf32> to vector<2x8x8xf32>
    %134 = arith.mulf %129, %133 : vector<2x8x8xf32>
    %135 = arith.truncf %134 : vector<2x8x8xf32> to vector<2x8x8xbf16>
    "tpu.trace_start"() <{level = 10 : i32, message = "bqk,bkd->bqd"}> : () -> ()
    %cst_47 = arith.constant dense<0.000000e+00> : vector<2x8x8xf32>
    %136 = tpu.matmul %135, %121, %cst_47 {dimension_numbers = #tpu.dot_dimension_numbers<[2], [1], [1], [2], [0, 0, 0, 1, 1, 2], [0], [0]>} : vector<2x8x8xbf16>, vector<2x8x8xbf16>, vector<2x8x8xf32> -> vector<2x8x8xf32>
    "tpu.trace_stop"() : () -> ()
    %137 = vector.shape_cast %136 : vector<2x8x8xf32> to vector<16x8xf32>
    %138 = arith.truncf %137 : vector<16x8xf32> to vector<16x8xbf16>
    %139 = vector.extract_strided_slice %10 {offsets = [24, 0], sizes = [8, 32], strides = [1, 1]} : vector<32x32xbf16> to vector<8x32xbf16>
    %cst_48 = arith.constant dense<0.000000e+00> : vector<16x32xf32>
    %140 = tpu.matmul %138, %139, %cst_48 {dimension_numbers = #tpu.dot_dimension_numbers<[1], [0], [0], [1], [0, 0, 1, 1], [], []>} : vector<16x8xbf16>, vector<8x32xbf16>, vector<16x32xf32> -> vector<16x32xf32>
    %141 = arith.addf %115, %140 : vector<16x32xf32>
    %142 = arith.addf %5, %141 : vector<16x32xf32>
    %143 = vector.broadcast %19 : vector<1x32xf32> to vector<16x32xf32>
    %144 = arith.addf %142, %143 : vector<16x32xf32>
    %cst_49 = arith.constant dense<0.000000e+00> : vector<16xf32>
    %145 = vector.multi_reduction <add>, %144, %cst_49 [1] : vector<16x32xf32> to vector<16xf32>
    %146 = vector.shape_cast %145 : vector<16xf32> to vector<16x1xf32>
    %cst_50 = arith.constant 3.200000e+01 : f32
    %147 = vector.broadcast %cst_50 : f32 to vector<16x1xf32>
    %148 = arith.divf %146, %147 : vector<16x1xf32>
    %149 = vector.broadcast %148 : vector<16x1xf32> to vector<16x32xf32>
    %150 = arith.subf %144, %149 : vector<16x32xf32>
    %151 = arith.mulf %150, %150 : vector<16x32xf32>
    %cst_51 = arith.constant dense<0.000000e+00> : vector<16xf32>
    %152 = vector.multi_reduction <add>, %151, %cst_51 [1] : vector<16x32xf32> to vector<16xf32>
    %153 = vector.shape_cast %152 : vector<16xf32> to vector<16x1xf32>
    %cst_52 = arith.constant 3.200000e+01 : f32
    %154 = vector.broadcast %cst_52 : f32 to vector<16x1xf32>
    %155 = arith.divf %153, %154 : vector<16x1xf32>
    %156 = vector.broadcast %148 : vector<16x1xf32> to vector<16x32xf32>
    %157 = arith.subf %144, %156 : vector<16x32xf32>
    %cst_53 = arith.constant 9.99999974E-6 : f32
    %158 = vector.broadcast %cst_53 : f32 to vector<16x1xf32>
    %159 = arith.addf %155, %158 : vector<16x1xf32>
    %160 = math.rsqrt %159 : vector<16x1xf32>
    %161 = vector.broadcast %160 : vector<16x1xf32> to vector<16x32xf32>
    %162 = arith.mulf %157, %161 : vector<16x32xf32>
    %163 = vector.broadcast %20 : vector<1x32xf32> to vector<16x32xf32>
    %164 = arith.mulf %162, %163 : vector<16x32xf32>
    %165 = vector.broadcast %21 : vector<1x32xf32> to vector<16x32xf32>
    %166 = arith.addf %164, %165 : vector<16x32xf32>
    %167 = arith.truncf %166 : vector<16x32xf32> to vector<16x32xbf16>
    %cst_54 = arith.constant dense<0.000000e+00> : vector<16x128xf32>
    %168 = tpu.matmul %167, %12, %cst_54 {dimension_numbers = #tpu.dot_dimension_numbers<[1], [0], [0], [1], [0, 0, 1, 1], [], []>} : vector<16x32xbf16>, vector<32x128xbf16>, vector<16x128xf32> -> vector<16x128xf32>
    %169 = vector.broadcast %26 : vector<1x128xf32> to vector<16x128xf32>
    %170 = arith.addf %168, %169 : vector<16x128xf32>
    %171 = arith.mulf %170, %170 : vector<16x128xf32>
    %172 = arith.mulf %170, %171 : vector<16x128xf32>
    %cst_55 = arith.constant 4.471500e-02 : f32
    %173 = vector.broadcast %cst_55 : f32 to vector<16x128xf32>
    %174 = arith.mulf %173, %172 : vector<16x128xf32>
    %175 = arith.addf %170, %174 : vector<16x128xf32>
    %cst_56 = arith.constant 0.797884583 : f32
    %176 = vector.broadcast %cst_56 : f32 to vector<16x128xf32>
    %177 = arith.mulf %176, %175 : vector<16x128xf32>
    %178 = math.tanh %177 : vector<16x128xf32>
    %cst_57 = arith.constant 1.000000e+00 : f32
    %179 = vector.broadcast %cst_57 : f32 to vector<16x128xf32>
    %180 = arith.addf %179, %178 : vector<16x128xf32>
    %cst_58 = arith.constant 5.000000e-01 : f32
    %181 = vector.broadcast %cst_58 : f32 to vector<16x128xf32>
    %182 = arith.mulf %181, %180 : vector<16x128xf32>
    %183 = arith.mulf %170, %182 : vector<16x128xf32>
    %184 = arith.truncf %183 : vector<16x128xf32> to vector<16x128xbf16>
    %cst_59 = arith.constant dense<0.000000e+00> : vector<16x32xf32>
    %185 = tpu.matmul %184, %14, %cst_59 {dimension_numbers = #tpu.dot_dimension_numbers<[1], [0], [0], [1], [0, 0, 1, 1], [], []>} : vector<16x128xbf16>, vector<128x32xbf16>, vector<16x32xf32> -> vector<16x32xf32>
    %186 = vector.broadcast %22 : vector<1x32xf32> to vector<16x32xf32>
    %187 = arith.addf %185, %186 : vector<16x32xf32>
    %188 = arith.addf %166, %187 : vector<16x32xf32>
    %cst_60 = arith.constant dense<0.000000e+00> : vector<16xf32>
    %189 = vector.multi_reduction <add>, %188, %cst_60 [1] : vector<16x32xf32> to vector<16xf32>
    %190 = vector.shape_cast %189 : vector<16xf32> to vector<16x1xf32>
    %cst_61 = arith.constant 3.200000e+01 : f32
    %191 = vector.broadcast %cst_61 : f32 to vector<16x1xf32>
    %192 = arith.divf %190, %191 : vector<16x1xf32>
    %193 = vector.broadcast %192 : vector<16x1xf32> to vector<16x32xf32>
    %194 = arith.subf %188, %193 : vector<16x32xf32>
    %195 = arith.mulf %194, %194 : vector<16x32xf32>
    %cst_62 = arith.constant dense<0.000000e+00> : vector<16xf32>
    %196 = vector.multi_reduction <add>, %195, %cst_62 [1] : vector<16x32xf32> to vector<16xf32>
    %197 = vector.shape_cast %196 : vector<16xf32> to vector<16x1xf32>
    %cst_63 = arith.constant 3.200000e+01 : f32
    %198 = vector.broadcast %cst_63 : f32 to vector<16x1xf32>
    %199 = arith.divf %197, %198 : vector<16x1xf32>
    %200 = vector.broadcast %192 : vector<16x1xf32> to vector<16x32xf32>
    %201 = arith.subf %188, %200 : vector<16x32xf32>
    %cst_64 = arith.constant 9.99999974E-6 : f32
    %202 = vector.broadcast %cst_64 : f32 to vector<16x1xf32>
    %203 = arith.addf %199, %202 : vector<16x1xf32>
    %204 = math.rsqrt %203 : vector<16x1xf32>
    %205 = vector.broadcast %204 : vector<16x1xf32> to vector<16x32xf32>
    %206 = arith.mulf %201, %205 : vector<16x32xf32>
    %207 = vector.broadcast %23 : vector<1x32xf32> to vector<16x32xf32>
    %208 = arith.mulf %206, %207 : vector<16x32xf32>
    %209 = vector.broadcast %24 : vector<1x32xf32> to vector<16x32xf32>
    %210 = arith.addf %208, %209 : vector<16x32xf32>
    %c1 = arith.constant 1 : index
    %c0_65 = arith.constant 0 : index
    %c0_66 = arith.constant 0 : index
    %211 = vector.load %arg4[%c1, %c0_65, %c0_66] : memref<2x32x96xbf16, #tpu.memory_space<vmem>>, vector<1x32x96xbf16>
    %212 = vector.shape_cast %211 : vector<1x32x96xbf16> to vector<32x96xbf16>
    %c1_67 = arith.constant 1 : index
    %c0_68 = arith.constant 0 : index
    %c0_69 = arith.constant 0 : index
    %213 = vector.load %arg5[%c1_67, %c0_68, %c0_69] : memref<2x32x32xbf16, #tpu.memory_space<vmem>>, vector<1x32x32xbf16>
    %214 = vector.shape_cast %213 : vector<1x32x32xbf16> to vector<32x32xbf16>
    %c1_70 = arith.constant 1 : index
    %c0_71 = arith.constant 0 : index
    %c0_72 = arith.constant 0 : index
    %215 = vector.load %arg6[%c1_70, %c0_71, %c0_72] : memref<2x32x128xbf16, #tpu.memory_space<vmem>>, vector<1x32x128xbf16>
    %216 = vector.shape_cast %215 : vector<1x32x128xbf16> to vector<32x128xbf16>
    %c1_73 = arith.constant 1 : index
    %c0_74 = arith.constant 0 : index
    %c0_75 = arith.constant 0 : index
    %217 = vector.load %arg7[%c1_73, %c0_74, %c0_75] : memref<2x128x32xbf16, #tpu.memory_space<vmem>>, vector<1x128x32xbf16>
    %218 = vector.shape_cast %217 : vector<1x128x32xbf16> to vector<128x32xbf16>
    %c1_76 = arith.constant 1 : index
    %c0_77 = arith.constant 0 : index
    %c0_78 = arith.constant 0 : index
    %219 = vector.load %arg8[%c1_76, %c0_77, %c0_78] : memref<2x1x96xf32, #tpu.memory_space<vmem>>, vector<1x1x96xf32>
    %220 = vector.shape_cast %219 : vector<1x1x96xf32> to vector<1x96xf32>
    %c1_79 = arith.constant 1 : index
    %c0_80 = arith.constant 0 : index
    %c0_81 = arith.constant 0 : index
    %221 = vector.load %arg9[%c1_79, %c0_80, %c0_81] : memref<2x6x32xf32, #tpu.memory_space<vmem>>, vector<1x6x32xf32>
    %222 = vector.shape_cast %221 : vector<1x6x32xf32> to vector<6x32xf32>
    %223 = vector.extract_strided_slice %222 {offsets = [0, 0], sizes = [1, 32], strides = [1, 1]} : vector<6x32xf32> to vector<1x32xf32>
    %224 = vector.extract_strided_slice %222 {offsets = [1, 0], sizes = [1, 32], strides = [1, 1]} : vector<6x32xf32> to vector<1x32xf32>
    %225 = vector.extract_strided_slice %222 {offsets = [2, 0], sizes = [1, 32], strides = [1, 1]} : vector<6x32xf32> to vector<1x32xf32>
    %226 = vector.extract_strided_slice %222 {offsets = [3, 0], sizes = [1, 32], strides = [1, 1]} : vector<6x32xf32> to vector<1x32xf32>
    %227 = vector.extract_strided_slice %222 {offsets = [4, 0], sizes = [1, 32], strides = [1, 1]} : vector<6x32xf32> to vector<1x32xf32>
    %228 = vector.extract_strided_slice %222 {offsets = [5, 0], sizes = [1, 32], strides = [1, 1]} : vector<6x32xf32> to vector<1x32xf32>
    %c1_82 = arith.constant 1 : index
    %c0_83 = arith.constant 0 : index
    %c0_84 = arith.constant 0 : index
    %229 = vector.load %arg10[%c1_82, %c0_83, %c0_84] : memref<2x1x128xf32, #tpu.memory_space<vmem>>, vector<1x1x128xf32>
    %230 = vector.shape_cast %229 : vector<1x1x128xf32> to vector<1x128xf32>
    %231 = arith.truncf %210 : vector<16x32xf32> to vector<16x32xbf16>
    %cst_85 = arith.constant dense<0.000000e+00> : vector<16x96xf32>
    %232 = tpu.matmul %231, %212, %cst_85 {dimension_numbers = #tpu.dot_dimension_numbers<[1], [0], [0], [1], [0, 0, 1, 1], [], []>} : vector<16x32xbf16>, vector<32x96xbf16>, vector<16x96xf32> -> vector<16x96xf32>
    %233 = vector.broadcast %220 : vector<1x96xf32> to vector<16x96xf32>
    %234 = arith.addf %232, %233 : vector<16x96xf32>
    %235 = vector.extract_strided_slice %234 {offsets = [0, 0], sizes = [16, 32], strides = [1, 1]} : vector<16x96xf32> to vector<16x32xf32>
    %236 = vector.shape_cast %235 : vector<16x32xf32> to vector<2x8x32xf32>
    %237 = vector.extract_strided_slice %234 {offsets = [0, 32], sizes = [16, 32], strides = [1, 1]} : vector<16x96xf32> to vector<16x32xf32>
    %238 = vector.shape_cast %237 : vector<16x32xf32> to vector<2x8x32xf32>
    %239 = vector.extract_strided_slice %234 {offsets = [0, 64], sizes = [16, 32], strides = [1, 1]} : vector<16x96xf32> to vector<16x32xf32>
    %240 = vector.shape_cast %239 : vector<16x32xf32> to vector<2x8x32xf32>
    %cst_86 = arith.constant 0.000000e+00 : f32
    %241 = vector.broadcast %cst_86 : f32 to vector<16x32xf32>
    %242 = vector.extract_strided_slice %236 {offsets = [0, 0, 0], sizes = [2, 8, 8], strides = [1, 1, 1]} : vector<2x8x32xf32> to vector<2x8x8xf32>
    %243 = arith.truncf %242 : vector<2x8x8xf32> to vector<2x8x8xbf16>
    %244 = vector.extract_strided_slice %238 {offsets = [0, 0, 0], sizes = [2, 8, 8], strides = [1, 1, 1]} : vector<2x8x32xf32> to vector<2x8x8xf32>
    %245 = arith.truncf %244 : vector<2x8x8xf32> to vector<2x8x8xbf16>
    %246 = vector.extract_strided_slice %240 {offsets = [0, 0, 0], sizes = [2, 8, 8], strides = [1, 1, 1]} : vector<2x8x32xf32> to vector<2x8x8xf32>
    %247 = arith.truncf %246 : vector<2x8x8xf32> to vector<2x8x8xbf16>
    "tpu.trace_start"() <{level = 10 : i32, message = "bqd,bkd->bqk"}> : () -> ()
    %cst_87 = arith.constant dense<0.000000e+00> : vector<2x8x8xf32>
    %248 = tpu.matmul %243, %245, %cst_87 {dimension_numbers = #tpu.dot_dimension_numbers<[2], [2], [1], [1], [0, 0, 0, 1, 1, 1], [0], [0]>} : vector<2x8x8xbf16>, vector<2x8x8xbf16>, vector<2x8x8xf32> -> vector<2x8x8xf32>
    "tpu.trace_stop"() : () -> ()
    %249 = vector.broadcast %6 : vector<2x1x8xf32> to vector<2x8x8xf32>
    %250 = arith.addf %248, %249 : vector<2x8x8xf32>
    %cst_88 = arith.constant dense<0xFF800000> : vector<2x8xf32>
    %251 = vector.multi_reduction <maximumf>, %250, %cst_88 [2] : vector<2x8x8xf32> to vector<2x8xf32>
    %252 = vector.shape_cast %251 : vector<2x8xf32> to vector<2x8x1xf32>
    %253 = vector.broadcast %252 : vector<2x8x1xf32> to vector<2x8x8xf32>
    %254 = arith.subf %250, %253 : vector<2x8x8xf32>
    %255 = math.exp %254 : vector<2x8x8xf32>
    %cst_89 = arith.constant dense<0.000000e+00> : vector<2x8xf32>
    %256 = vector.multi_reduction <add>, %255, %cst_89 [2] : vector<2x8x8xf32> to vector<2x8xf32>
    %257 = vector.shape_cast %256 : vector<2x8xf32> to vector<2x8x1xf32>
    %258 = tpu.reciprocal %257 {approx = true} : vector<2x8x1xf32> -> vector<2x8x1xf32>
    %259 = vector.broadcast %258 : vector<2x8x1xf32> to vector<2x8x8xf32>
    %260 = arith.mulf %255, %259 : vector<2x8x8xf32>
    %261 = arith.truncf %260 : vector<2x8x8xf32> to vector<2x8x8xbf16>
    "tpu.trace_start"() <{level = 10 : i32, message = "bqk,bkd->bqd"}> : () -> ()
    %cst_90 = arith.constant dense<0.000000e+00> : vector<2x8x8xf32>
    %262 = tpu.matmul %261, %247, %cst_90 {dimension_numbers = #tpu.dot_dimension_numbers<[2], [1], [1], [2], [0, 0, 0, 1, 1, 2], [0], [0]>} : vector<2x8x8xbf16>, vector<2x8x8xbf16>, vector<2x8x8xf32> -> vector<2x8x8xf32>
    "tpu.trace_stop"() : () -> ()
    %263 = vector.shape_cast %262 : vector<2x8x8xf32> to vector<16x8xf32>
    %264 = arith.truncf %263 : vector<16x8xf32> to vector<16x8xbf16>
    %265 = vector.extract_strided_slice %214 {offsets = [0, 0], sizes = [8, 32], strides = [1, 1]} : vector<32x32xbf16> to vector<8x32xbf16>
    %cst_91 = arith.constant dense<0.000000e+00> : vector<16x32xf32>
    %266 = tpu.matmul %264, %265, %cst_91 {dimension_numbers = #tpu.dot_dimension_numbers<[1], [0], [0], [1], [0, 0, 1, 1], [], []>} : vector<16x8xbf16>, vector<8x32xbf16>, vector<16x32xf32> -> vector<16x32xf32>
    %267 = arith.addf %241, %266 : vector<16x32xf32>
    %268 = vector.extract_strided_slice %236 {offsets = [0, 0, 8], sizes = [2, 8, 8], strides = [1, 1, 1]} : vector<2x8x32xf32> to vector<2x8x8xf32>
    %269 = arith.truncf %268 : vector<2x8x8xf32> to vector<2x8x8xbf16>
    %270 = vector.extract_strided_slice %238 {offsets = [0, 0, 8], sizes = [2, 8, 8], strides = [1, 1, 1]} : vector<2x8x32xf32> to vector<2x8x8xf32>
    %271 = arith.truncf %270 : vector<2x8x8xf32> to vector<2x8x8xbf16>
    %272 = vector.extract_strided_slice %240 {offsets = [0, 0, 8], sizes = [2, 8, 8], strides = [1, 1, 1]} : vector<2x8x32xf32> to vector<2x8x8xf32>
    %273 = arith.truncf %272 : vector<2x8x8xf32> to vector<2x8x8xbf16>
    "tpu.trace_start"() <{level = 10 : i32, message = "bqd,bkd->bqk"}> : () -> ()
    %cst_92 = arith.constant dense<0.000000e+00> : vector<2x8x8xf32>
    %274 = tpu.matmul %269, %271, %cst_92 {dimension_numbers = #tpu.dot_dimension_numbers<[2], [2], [1], [1], [0, 0, 0, 1, 1, 1], [0], [0]>} : vector<2x8x8xbf16>, vector<2x8x8xbf16>, vector<2x8x8xf32> -> vector<2x8x8xf32>
    "tpu.trace_stop"() : () -> ()
    %275 = vector.broadcast %6 : vector<2x1x8xf32> to vector<2x8x8xf32>
    %276 = arith.addf %274, %275 : vector<2x8x8xf32>
    %cst_93 = arith.constant dense<0xFF800000> : vector<2x8xf32>
    %277 = vector.multi_reduction <maximumf>, %276, %cst_93 [2] : vector<2x8x8xf32> to vector<2x8xf32>
    %278 = vector.shape_cast %277 : vector<2x8xf32> to vector<2x8x1xf32>
    %279 = vector.broadcast %278 : vector<2x8x1xf32> to vector<2x8x8xf32>
    %280 = arith.subf %276, %279 : vector<2x8x8xf32>
    %281 = math.exp %280 : vector<2x8x8xf32>
    %cst_94 = arith.constant dense<0.000000e+00> : vector<2x8xf32>
    %282 = vector.multi_reduction <add>, %281, %cst_94 [2] : vector<2x8x8xf32> to vector<2x8xf32>
    %283 = vector.shape_cast %282 : vector<2x8xf32> to vector<2x8x1xf32>
    %284 = tpu.reciprocal %283 {approx = true} : vector<2x8x1xf32> -> vector<2x8x1xf32>
    %285 = vector.broadcast %284 : vector<2x8x1xf32> to vector<2x8x8xf32>
    %286 = arith.mulf %281, %285 : vector<2x8x8xf32>
    %287 = arith.truncf %286 : vector<2x8x8xf32> to vector<2x8x8xbf16>
    "tpu.trace_start"() <{level = 10 : i32, message = "bqk,bkd->bqd"}> : () -> ()
    %cst_95 = arith.constant dense<0.000000e+00> : vector<2x8x8xf32>
    %288 = tpu.matmul %287, %273, %cst_95 {dimension_numbers = #tpu.dot_dimension_numbers<[2], [1], [1], [2], [0, 0, 0, 1, 1, 2], [0], [0]>} : vector<2x8x8xbf16>, vector<2x8x8xbf16>, vector<2x8x8xf32> -> vector<2x8x8xf32>
    "tpu.trace_stop"() : () -> ()
    %289 = vector.shape_cast %288 : vector<2x8x8xf32> to vector<16x8xf32>
    %290 = arith.truncf %289 : vector<16x8xf32> to vector<16x8xbf16>
    %291 = vector.extract_strided_slice %214 {offsets = [8, 0], sizes = [8, 32], strides = [1, 1]} : vector<32x32xbf16> to vector<8x32xbf16>
    %cst_96 = arith.constant dense<0.000000e+00> : vector<16x32xf32>
    %292 = tpu.matmul %290, %291, %cst_96 {dimension_numbers = #tpu.dot_dimension_numbers<[1], [0], [0], [1], [0, 0, 1, 1], [], []>} : vector<16x8xbf16>, vector<8x32xbf16>, vector<16x32xf32> -> vector<16x32xf32>
    %293 = arith.addf %267, %292 : vector<16x32xf32>
    %294 = vector.extract_strided_slice %236 {offsets = [0, 0, 16], sizes = [2, 8, 8], strides = [1, 1, 1]} : vector<2x8x32xf32> to vector<2x8x8xf32>
    %295 = arith.truncf %294 : vector<2x8x8xf32> to vector<2x8x8xbf16>
    %296 = vector.extract_strided_slice %238 {offsets = [0, 0, 16], sizes = [2, 8, 8], strides = [1, 1, 1]} : vector<2x8x32xf32> to vector<2x8x8xf32>
    %297 = arith.truncf %296 : vector<2x8x8xf32> to vector<2x8x8xbf16>
    %298 = vector.extract_strided_slice %240 {offsets = [0, 0, 16], sizes = [2, 8, 8], strides = [1, 1, 1]} : vector<2x8x32xf32> to vector<2x8x8xf32>
    %299 = arith.truncf %298 : vector<2x8x8xf32> to vector<2x8x8xbf16>
    "tpu.trace_start"() <{level = 10 : i32, message = "bqd,bkd->bqk"}> : () -> ()
    %cst_97 = arith.constant dense<0.000000e+00> : vector<2x8x8xf32>
    %300 = tpu.matmul %295, %297, %cst_97 {dimension_numbers = #tpu.dot_dimension_numbers<[2], [2], [1], [1], [0, 0, 0, 1, 1, 1], [0], [0]>} : vector<2x8x8xbf16>, vector<2x8x8xbf16>, vector<2x8x8xf32> -> vector<2x8x8xf32>
    "tpu.trace_stop"() : () -> ()
    %301 = vector.broadcast %6 : vector<2x1x8xf32> to vector<2x8x8xf32>
    %302 = arith.addf %300, %301 : vector<2x8x8xf32>
    %cst_98 = arith.constant dense<0xFF800000> : vector<2x8xf32>
    %303 = vector.multi_reduction <maximumf>, %302, %cst_98 [2] : vector<2x8x8xf32> to vector<2x8xf32>
    %304 = vector.shape_cast %303 : vector<2x8xf32> to vector<2x8x1xf32>
    %305 = vector.broadcast %304 : vector<2x8x1xf32> to vector<2x8x8xf32>
    %306 = arith.subf %302, %305 : vector<2x8x8xf32>
    %307 = math.exp %306 : vector<2x8x8xf32>
    %cst_99 = arith.constant dense<0.000000e+00> : vector<2x8xf32>
    %308 = vector.multi_reduction <add>, %307, %cst_99 [2] : vector<2x8x8xf32> to vector<2x8xf32>
    %309 = vector.shape_cast %308 : vector<2x8xf32> to vector<2x8x1xf32>
    %310 = tpu.reciprocal %309 {approx = true} : vector<2x8x1xf32> -> vector<2x8x1xf32>
    %311 = vector.broadcast %310 : vector<2x8x1xf32> to vector<2x8x8xf32>
    %312 = arith.mulf %307, %311 : vector<2x8x8xf32>
    %313 = arith.truncf %312 : vector<2x8x8xf32> to vector<2x8x8xbf16>
    "tpu.trace_start"() <{level = 10 : i32, message = "bqk,bkd->bqd"}> : () -> ()
    %cst_100 = arith.constant dense<0.000000e+00> : vector<2x8x8xf32>
    %314 = tpu.matmul %313, %299, %cst_100 {dimension_numbers = #tpu.dot_dimension_numbers<[2], [1], [1], [2], [0, 0, 0, 1, 1, 2], [0], [0]>} : vector<2x8x8xbf16>, vector<2x8x8xbf16>, vector<2x8x8xf32> -> vector<2x8x8xf32>
    "tpu.trace_stop"() : () -> ()
    %315 = vector.shape_cast %314 : vector<2x8x8xf32> to vector<16x8xf32>
    %316 = arith.truncf %315 : vector<16x8xf32> to vector<16x8xbf16>
    %317 = vector.extract_strided_slice %214 {offsets = [16, 0], sizes = [8, 32], strides = [1, 1]} : vector<32x32xbf16> to vector<8x32xbf16>
    %cst_101 = arith.constant dense<0.000000e+00> : vector<16x32xf32>
    %318 = tpu.matmul %316, %317, %cst_101 {dimension_numbers = #tpu.dot_dimension_numbers<[1], [0], [0], [1], [0, 0, 1, 1], [], []>} : vector<16x8xbf16>, vector<8x32xbf16>, vector<16x32xf32> -> vector<16x32xf32>
    %319 = arith.addf %293, %318 : vector<16x32xf32>
    %320 = vector.extract_strided_slice %236 {offsets = [0, 0, 24], sizes = [2, 8, 8], strides = [1, 1, 1]} : vector<2x8x32xf32> to vector<2x8x8xf32>
    %321 = arith.truncf %320 : vector<2x8x8xf32> to vector<2x8x8xbf16>
    %322 = vector.extract_strided_slice %238 {offsets = [0, 0, 24], sizes = [2, 8, 8], strides = [1, 1, 1]} : vector<2x8x32xf32> to vector<2x8x8xf32>
    %323 = arith.truncf %322 : vector<2x8x8xf32> to vector<2x8x8xbf16>
    %324 = vector.extract_strided_slice %240 {offsets = [0, 0, 24], sizes = [2, 8, 8], strides = [1, 1, 1]} : vector<2x8x32xf32> to vector<2x8x8xf32>
    %325 = arith.truncf %324 : vector<2x8x8xf32> to vector<2x8x8xbf16>
    "tpu.trace_start"() <{level = 10 : i32, message = "bqd,bkd->bqk"}> : () -> ()
    %cst_102 = arith.constant dense<0.000000e+00> : vector<2x8x8xf32>
    %326 = tpu.matmul %321, %323, %cst_102 {dimension_numbers = #tpu.dot_dimension_numbers<[2], [2], [1], [1], [0, 0, 0, 1, 1, 1], [0], [0]>} : vector<2x8x8xbf16>, vector<2x8x8xbf16>, vector<2x8x8xf32> -> vector<2x8x8xf32>
    "tpu.trace_stop"() : () -> ()
    %327 = vector.broadcast %6 : vector<2x1x8xf32> to vector<2x8x8xf32>
    %328 = arith.addf %326, %327 : vector<2x8x8xf32>
    %cst_103 = arith.constant dense<0xFF800000> : vector<2x8xf32>
    %329 = vector.multi_reduction <maximumf>, %328, %cst_103 [2] : vector<2x8x8xf32> to vector<2x8xf32>
    %330 = vector.shape_cast %329 : vector<2x8xf32> to vector<2x8x1xf32>
    %331 = vector.broadcast %330 : vector<2x8x1xf32> to vector<2x8x8xf32>
    %332 = arith.subf %328, %331 : vector<2x8x8xf32>
    %333 = math.exp %332 : vector<2x8x8xf32>
    %cst_104 = arith.constant dense<0.000000e+00> : vector<2x8xf32>
    %334 = vector.multi_reduction <add>, %333, %cst_104 [2] : vector<2x8x8xf32> to vector<2x8xf32>
    %335 = vector.shape_cast %334 : vector<2x8xf32> to vector<2x8x1xf32>
    %336 = tpu.reciprocal %335 {approx = true} : vector<2x8x1xf32> -> vector<2x8x1xf32>
    %337 = vector.broadcast %336 : vector<2x8x1xf32> to vector<2x8x8xf32>
    %338 = arith.mulf %333, %337 : vector<2x8x8xf32>
    %339 = arith.truncf %338 : vector<2x8x8xf32> to vector<2x8x8xbf16>
    "tpu.trace_start"() <{level = 10 : i32, message = "bqk,bkd->bqd"}> : () -> ()
    %cst_105 = arith.constant dense<0.000000e+00> : vector<2x8x8xf32>
    %340 = tpu.matmul %339, %325, %cst_105 {dimension_numbers = #tpu.dot_dimension_numbers<[2], [1], [1], [2], [0, 0, 0, 1, 1, 2], [0], [0]>} : vector<2x8x8xbf16>, vector<2x8x8xbf16>, vector<2x8x8xf32> -> vector<2x8x8xf32>
    "tpu.trace_stop"() : () -> ()
    %341 = vector.shape_cast %340 : vector<2x8x8xf32> to vector<16x8xf32>
    %342 = arith.truncf %341 : vector<16x8xf32> to vector<16x8xbf16>
    %343 = vector.extract_strided_slice %214 {offsets = [24, 0], sizes = [8, 32], strides = [1, 1]} : vector<32x32xbf16> to vector<8x32xbf16>
    %cst_106 = arith.constant dense<0.000000e+00> : vector<16x32xf32>
    %344 = tpu.matmul %342, %343, %cst_106 {dimension_numbers = #tpu.dot_dimension_numbers<[1], [0], [0], [1], [0, 0, 1, 1], [], []>} : vector<16x8xbf16>, vector<8x32xbf16>, vector<16x32xf32> -> vector<16x32xf32>
    %345 = arith.addf %319, %344 : vector<16x32xf32>
    %346 = arith.addf %210, %345 : vector<16x32xf32>
    %347 = vector.broadcast %223 : vector<1x32xf32> to vector<16x32xf32>
    %348 = arith.addf %346, %347 : vector<16x32xf32>
    %cst_107 = arith.constant dense<0.000000e+00> : vector<16xf32>
    %349 = vector.multi_reduction <add>, %348, %cst_107 [1] : vector<16x32xf32> to vector<16xf32>
    %350 = vector.shape_cast %349 : vector<16xf32> to vector<16x1xf32>
    %cst_108 = arith.constant 3.200000e+01 : f32
    %351 = vector.broadcast %cst_108 : f32 to vector<16x1xf32>
    %352 = arith.divf %350, %351 : vector<16x1xf32>
    %353 = vector.broadcast %352 : vector<16x1xf32> to vector<16x32xf32>
    %354 = arith.subf %348, %353 : vector<16x32xf32>
    %355 = arith.mulf %354, %354 : vector<16x32xf32>
    %cst_109 = arith.constant dense<0.000000e+00> : vector<16xf32>
    %356 = vector.multi_reduction <add>, %355, %cst_109 [1] : vector<16x32xf32> to vector<16xf32>
    %357 = vector.shape_cast %356 : vector<16xf32> to vector<16x1xf32>
    %cst_110 = arith.constant 3.200000e+01 : f32
    %358 = vector.broadcast %cst_110 : f32 to vector<16x1xf32>
    %359 = arith.divf %357, %358 : vector<16x1xf32>
    %360 = vector.broadcast %352 : vector<16x1xf32> to vector<16x32xf32>
    %361 = arith.subf %348, %360 : vector<16x32xf32>
    %cst_111 = arith.constant 9.99999974E-6 : f32
    %362 = vector.broadcast %cst_111 : f32 to vector<16x1xf32>
    %363 = arith.addf %359, %362 : vector<16x1xf32>
    %364 = math.rsqrt %363 : vector<16x1xf32>
    %365 = vector.broadcast %364 : vector<16x1xf32> to vector<16x32xf32>
    %366 = arith.mulf %361, %365 : vector<16x32xf32>
    %367 = vector.broadcast %224 : vector<1x32xf32> to vector<16x32xf32>
    %368 = arith.mulf %366, %367 : vector<16x32xf32>
    %369 = vector.broadcast %225 : vector<1x32xf32> to vector<16x32xf32>
    %370 = arith.addf %368, %369 : vector<16x32xf32>
    %371 = arith.truncf %370 : vector<16x32xf32> to vector<16x32xbf16>
    %cst_112 = arith.constant dense<0.000000e+00> : vector<16x128xf32>
    %372 = tpu.matmul %371, %216, %cst_112 {dimension_numbers = #tpu.dot_dimension_numbers<[1], [0], [0], [1], [0, 0, 1, 1], [], []>} : vector<16x32xbf16>, vector<32x128xbf16>, vector<16x128xf32> -> vector<16x128xf32>
    %373 = vector.broadcast %230 : vector<1x128xf32> to vector<16x128xf32>
    %374 = arith.addf %372, %373 : vector<16x128xf32>
    %375 = arith.mulf %374, %374 : vector<16x128xf32>
    %376 = arith.mulf %374, %375 : vector<16x128xf32>
    %cst_113 = arith.constant 4.471500e-02 : f32
    %377 = vector.broadcast %cst_113 : f32 to vector<16x128xf32>
    %378 = arith.mulf %377, %376 : vector<16x128xf32>
    %379 = arith.addf %374, %378 : vector<16x128xf32>
    %cst_114 = arith.constant 0.797884583 : f32
    %380 = vector.broadcast %cst_114 : f32 to vector<16x128xf32>
    %381 = arith.mulf %380, %379 : vector<16x128xf32>
    %382 = math.tanh %381 : vector<16x128xf32>
    %cst_115 = arith.constant 1.000000e+00 : f32
    %383 = vector.broadcast %cst_115 : f32 to vector<16x128xf32>
    %384 = arith.addf %383, %382 : vector<16x128xf32>
    %cst_116 = arith.constant 5.000000e-01 : f32
    %385 = vector.broadcast %cst_116 : f32 to vector<16x128xf32>
    %386 = arith.mulf %385, %384 : vector<16x128xf32>
    %387 = arith.mulf %374, %386 : vector<16x128xf32>
    %388 = arith.truncf %387 : vector<16x128xf32> to vector<16x128xbf16>
    %cst_117 = arith.constant dense<0.000000e+00> : vector<16x32xf32>
    %389 = tpu.matmul %388, %218, %cst_117 {dimension_numbers = #tpu.dot_dimension_numbers<[1], [0], [0], [1], [0, 0, 1, 1], [], []>} : vector<16x128xbf16>, vector<128x32xbf16>, vector<16x32xf32> -> vector<16x32xf32>
    %390 = vector.broadcast %226 : vector<1x32xf32> to vector<16x32xf32>
    %391 = arith.addf %389, %390 : vector<16x32xf32>
    %392 = arith.addf %370, %391 : vector<16x32xf32>
    %cst_118 = arith.constant dense<0.000000e+00> : vector<16xf32>
    %393 = vector.multi_reduction <add>, %392, %cst_118 [1] : vector<16x32xf32> to vector<16xf32>
    %394 = vector.shape_cast %393 : vector<16xf32> to vector<16x1xf32>
    %cst_119 = arith.constant 3.200000e+01 : f32
    %395 = vector.broadcast %cst_119 : f32 to vector<16x1xf32>
    %396 = arith.divf %394, %395 : vector<16x1xf32>
    %397 = vector.broadcast %396 : vector<16x1xf32> to vector<16x32xf32>
    %398 = arith.subf %392, %397 : vector<16x32xf32>
    %399 = arith.mulf %398, %398 : vector<16x32xf32>
    %cst_120 = arith.constant dense<0.000000e+00> : vector<16xf32>
    %400 = vector.multi_reduction <add>, %399, %cst_120 [1] : vector<16x32xf32> to vector<16xf32>
    %401 = vector.shape_cast %400 : vector<16xf32> to vector<16x1xf32>
    %cst_121 = arith.constant 3.200000e+01 : f32
    %402 = vector.broadcast %cst_121 : f32 to vector<16x1xf32>
    %403 = arith.divf %401, %402 : vector<16x1xf32>
    %404 = vector.broadcast %396 : vector<16x1xf32> to vector<16x32xf32>
    %405 = arith.subf %392, %404 : vector<16x32xf32>
    %cst_122 = arith.constant 9.99999974E-6 : f32
    %406 = vector.broadcast %cst_122 : f32 to vector<16x1xf32>
    %407 = arith.addf %403, %406 : vector<16x1xf32>
    %408 = math.rsqrt %407 : vector<16x1xf32>
    %409 = vector.broadcast %408 : vector<16x1xf32> to vector<16x32xf32>
    %410 = arith.mulf %405, %409 : vector<16x32xf32>
    %411 = vector.broadcast %227 : vector<1x32xf32> to vector<16x32xf32>
    %412 = arith.mulf %410, %411 : vector<16x32xf32>
    %413 = vector.broadcast %228 : vector<1x32xf32> to vector<16x32xf32>
    %414 = arith.addf %412, %413 : vector<16x32xf32>
    %415 = vector.shape_cast %414 : vector<16x32xf32> to vector<2x8x32xf32>
    %c0_123 = arith.constant 0 : index
    %c0_124 = arith.constant 0 : index
    %c0_125 = arith.constant 0 : index
    %416 = vector.load %arg11[%c0_123, %c0_124, %c0_125] : memref<2x8x32xf32, #tpu.memory_space<vmem>>, vector<2x8x32xf32>
    tpu.vector_store %arg11[%c0_123, %c0_124, %c0_125], %415 {strides = array<i32>} : memref<2x8x32xf32, #tpu.memory_space<vmem>>, vector<2x8x32xf32>,
    return
  }
  func.func @transform_0(%arg0: i32) -> (i32, i32, i32) {
    %c0_i32 = arith.constant 0 : i32
    %c0_i32_0 = arith.constant 0 : i32
    %c0_i32_1 = arith.constant 0 : i32
    %c0_i32_2 = arith.constant 0 : i32
    return %c0_i32, %c0_i32_0, %c0_i32_1 : i32, i32, i32
  }
  func.func @transform_1(%arg0: i32) -> (i32, i32, i32) {
    %c0_i32 = arith.constant 0 : i32
    %c0_i32_0 = arith.constant 0 : i32
    %c0_i32_1 = arith.constant 0 : i32
    %c0_i32_2 = arith.constant 0 : i32
    return %c0_i32, %c0_i32_0, %c0_i32_1 : i32, i32, i32
  }
  func.func @transform_2(%arg0: i32) -> (i32, i32) {
    %c0_i32 = arith.constant 0 : i32
    %c0_i32_0 = arith.constant 0 : i32
    %c0_i32_1 = arith.constant 0 : i32
    return %c0_i32, %c0_i32_0 : i32, i32
  }
  func.func @transform_3(%arg0: i32) -> (i32, i32, i32) {
    %c0_i32 = arith.constant 0 : i32
    %c0_i32_0 = arith.constant 0 : i32
    %c0_i32_1 = arith.constant 0 : i32
    %c0_i32_2 = arith.constant 0 : i32
    return %c0_i32, %c0_i32_0, %c0_i32_1 : i32, i32, i32
  }
  func.func @transform_4(%arg0: i32) -> (i32, i32, i32) {
    %c0_i32 = arith.constant 0 : i32
    %c0_i32_0 = arith.constant 0 : i32
    %c0_i32_1 = arith.constant 0 : i32
    %c0_i32_2 = arith.constant 0 : i32
    return %c0_i32, %c0_i32_0, %c0_i32_1 : i32, i32, i32
  }
  func.func @transform_5(%arg0: i32) -> (i32, i32, i32) {
    %c0_i32 = arith.constant 0 : i32
    %c0_i32_0 = arith.constant 0 : i32
    %c0_i32_1 = arith.constant 0 : i32
    %c0_i32_2 = arith.constant 0 : i32
    return %c0_i32, %c0_i32_0, %c0_i32_1 : i32, i32, i32
  }
  func.func @transform_6(%arg0: i32) -> (i32, i32, i32) {
    %c0_i32 = arith.constant 0 : i32
    %c0_i32_0 = arith.constant 0 : i32
    %c0_i32_1 = arith.constant 0 : i32
    %c0_i32_2 = arith.constant 0 : i32
    return %c0_i32, %c0_i32_0, %c0_i32_1 : i32, i32, i32
  }
  func.func @transform_7(%arg0: i32) -> (i32, i32, i32) {
    %c0_i32 = arith.constant 0 : i32
    %c0_i32_0 = arith.constant 0 : i32
    %c0_i32_1 = arith.constant 0 : i32
    %c0_i32_2 = arith.constant 0 : i32
    return %c0_i32, %c0_i32_0, %c0_i32_1 : i32, i32, i32
  }
  func.func @transform_8(%arg0: i32) -> (i32, i32, i32) {
    %c0_i32 = arith.constant 0 : i32
    %c0_i32_0 = arith.constant 0 : i32
    %c0_i32_1 = arith.constant 0 : i32
    %c0_i32_2 = arith.constant 0 : i32
    return %c0_i32, %c0_i32_0, %c0_i32_1 : i32, i32, i32
  }
  func.func @transform_9(%arg0: i32) -> (i32, i32, i32) {
    %c0_i32 = arith.constant 0 : i32
    %c0_i32_0 = arith.constant 0 : i32
    %c0_i32_1 = arith.constant 0 : i32
    %c0_i32_2 = arith.constant 0 : i32
    return %c0_i32, %c0_i32_0, %c0_i32_1 : i32, i32, i32
  }
  func.func @transform_10(%arg0: i32) -> (i32, i32, i32) {
    %c0_i32 = arith.constant 0 : i32
    %c0_i32_0 = arith.constant 0 : i32
    %c0_i32_1 = arith.constant 0 : i32
    %c0_i32_2 = arith.constant 0 : i32
    return %c0_i32, %c0_i32_0, %c0_i32_1 : i32, i32, i32
  }
}

</mosaic_0001>

<bundles_post_ra>
// kernel: tpu_custom_call.1
= control target key start
LH: loop header
LB: loop body
LE: loop exit
PB: predicated region body
PF: predicated region fallthrough
CT: control target
= control target key end

     0   :  { %s2587_s0 = inlined_call_operand.vmem [shape: f32[2,8,32], index: 0, kind: input, shape index: {}]   ;;  %s2588_s1 = inlined_call_operand.vmem [shape: f32[2,1,8], index: 1, kind: input, shape index: {}]   ;;  %s2589_s2 = inlined_call_operand.vmem [shape: f32[8,32], index: 2, kind: input, shape index: {}]   ;;  %s2590_s3 = inlined_call_operand.vmem [shape: bf16[2,32,96], index: 3, kind: input, shape index: {}]   ;;  %s2591_s4 = inlined_call_operand.vmem [shape: bf16[2,32,32], index: 4, kind: input, shape index: {}]   ;;  %s2592_s5 = inlined_call_operand.vmem [shape: bf16[2,32,128], index: 5, kind: input, shape index: {}]   ;;  %s2593_s6 = inlined_call_operand.vmem [shape: bf16[2,128,32], index: 6, kind: input, shape index: {}]   ;;  %s2594_s7 = inlined_call_operand.vmem [shape: f32[2,1,96], index: 7, kind: input, shape index: {}]   ;;  %s2595_s8 = inlined_call_operand.vmem [shape: f32[2,6,32], index: 8, kind: input, shape index: {}]   ;;  %s2596_s9 = inlined_call_operand.vmem [shape: f32[2,1,128], index: 9, kind: input, shape index: {}]   ;;  %s2597_s10 = inlined_call_operand.hbm [shape: f32[2,8,32], index: 10, kind: output, shape index: {}]  }
   0x1   :  { %v1911_v0 = vld [vmem:[%s2590_s3 + $0x8] sm:$0xff]  ;;  %v37_v1 = vld [vmem:[%s2587_s0] sm:$0xff] }
   0x2   :  { %v38_v2 = vld [vmem:[%s2587_s0 + $0x8] sm:$0xff]  ;;  %v39_v3 = vld [vmem:[%s2589_s2] sm:$0xff]  ;;  %101 = vmatpush.bf16.msra.mxu0 %v1911_v0 }
   0x3   :  { %v1910_v4 = vld [vmem:[%s2590_s3] sm:$0xff]  ;;  %v2158_v5 = vadd.f32 %v39_v3, %v37_v1  ;;  %v2160_v6 = vadd.f32 %v39_v3, %v38_v2 }
   0x4   :  { %15 = vsyncpa [#allocation3], 0  ;;  %vm91_vm0 = vcmask 261120   ;;  %v1949_v8 = vld [vmem:[%s2594_s7] ss:$0 sm:$0xff]  ;;  %s2073_s2 = smov 96  }
   0x5   :  { %v75_v7 = vpack.c.bf16 %v2160_v6, %v2158_v5  ;;  %s2074_s24 = smov 88   ;;  %s2075_s25 = smov 120   ;;  %vm122_vm1 = vcmask 64512   ;;  %vm195_vm2 = vcmask 1043456   ;;  %v2198_v33 = vld [vmem:[%s2588_s1] ss:$0 sm:$0xff] }
   0x6   :  { %102 = vmatpush.bf16.msra.mxu0 %v1910_v4  ;;  %s2076_s26 = smov 56   ;;  %v2207_v42 = vld [vmem:[%s2588_s1 + $0x1] ss:$0 sm:$0xff]  ;;  %s2077_s11 = smov 80  }
   0x7   :  { %s2078_s12 = smov 64   ;;  %s2079_s13 = smov 112  }
   0x8   :  { %s2080_s14 = smov 48   ;;  %s2081_s15 = smov 72  }
   0x9   :  { %1747 = vmatmul.msk.bf16.vlgmr.msra.gmra.mxu0 %vm91_vm0, %v75_v7  ;;  %s2082_s20 = smov 104   ;;  %s2083_s21 = smov 40  }
  0x86   :  { %v104_v9 = vpop.f32.mrf.mxu0 }
  0x87   :  { %v105_v10 = vadd.f32 %v1949_v8, %v104_v9 }
  0x89   :  { %v109_v11 = vpack.c.bf16 %v105_v10, %v105_v10 }
  0x8b   :  { %v118_v12 = vunpack.c.l.b16 %v109_v11 }
  0x8d   :  { %v2168_v13 = vpack.c.b16 %v118_v12, %v118_v12 }
  0x8e   :  { %v106_v14 = vpop.f32.mrf.mxu0 }
  0x8f   :  { %v107_v15 = vadd.f32 %v1949_v8, %v106_v14  ;;  %120 = vrot.lane.b32.xlu1 %v2168_v13, %s2073_s2  ;;  %236 = vrot.lane.b32.xlu0 %v2168_v13, %s2074_s24 }
  0x91   :  { %v110_v16 = vpack.c.bf16 %v107_v15, %v107_v15 }
  0x93   :  { %v143_v17 = vunpack.c.l.b16 %v110_v16 }
  0x95   :  { %v2174_v18 = vpack.c.b16 %v143_v17, %v143_v17 }
  0x97   :  { %259 = vrot.lane.b32.xlu2 %v2174_v18, %s2074_s24  ;;  %145 = vrot.lane.b32.xlu1 %v2174_v18, %s2073_s2 }
  0x98   :  { %234 = vrot.lane.b32.xlu0 %v2168_v13, %s2075_s25 }
  0x9f   :  { %257 = vrot.lane.b32.xlu2 %v2174_v18, %s2075_s25 }
  0xa7   :  { %304 = vrot.lane.b32.xlu2 %v2168_v13, %s2076_s26 }
  0xf1   :  { %v260_v19 = vpop.permute.xlu2 %259 }
  0xf2   :  { %v265_v20 = vsel %vm122_vm1, %v260_v19, 0 }
  0xf3   :  { %274 = vmatpush.bf16.xpose.msra.mxu1 %v265_v20 }
  0xf9   :  { %v258_v21 = vpop.permute.xlu2 %257 }
  0xfa   :  { %1753 = vmatmul.msk.bf16.vlgmr.msra.gmra.mxu1 %vm122_vm1, %v258_v21 }
 0x101   :  { %v121_v22 = vpop.permute.xlu1 %120  ;;  %v237_v23 = vpop.permute.xlu0 %236 }
 0x102   :  { %v127_v24 = vsel %vm122_vm1, %v121_v22, 0  ;;  %v242_v25 = vsel %vm122_vm1, %v237_v23, 0  ;;  %v305_v26 = vpop.permute.xlu2 %304 }
 0x103   :  { %136 = vmatpush.bf16.xpose.msra.mxu2 %v127_v24  ;;  %251 = vmatpush.bf16.xpose.msrb.mxu0 %v242_v25  ;;  %v310_v30 = vsel %vm195_vm2, %v305_v26, 0 }
 0x109   :  { %v146_v27 = vpop.permute.xlu1 %145 }
 0x10a   :  { %v235_v28 = vpop.permute.xlu0 %234  ;;  %1748 = vmatmul.msk.bf16.vlgmr.msra.gmra.mxu2 %vm122_vm1, %v109_v11  ;;  %v151_v29 = vsel %vm122_vm1, %v146_v27, 0 }
 0x10b   :  { %1752 = vmatmul.msk.bf16.vlgmr.msrb.gmra.mxu0 %vm122_vm1, %v235_v28  ;;  %160 = vmatpush.bf16.xpose.msrb.mxu2 %v151_v29 }
 0x113   :  { %319 = vmatpush.bf16.msra.mxu2 %v310_v30 }
 0x11a   :  { %1749 = vmatmul.msk.bf16.vlgmr.msrb.gmra.mxu2 %vm122_vm1, %v110_v16  ;;  %v49_v16 = vld [vmem:[%s2591_s4 + $0x4] sm:$0xf] }
 0x11b   :  { %v351_v17 = vsel %vm195_vm2, %v49_v16, 0 }
 0x11c   :  { %360 = vmatpush.bf16.msra.mxu0 %v351_v17 }
 0x177   :  { %v276_v31 = vpop.f32.mrf.mxu1 }
 0x178   :  { %v277_v46 = vadd.f32 %v2207_v42, %v276_v31 }
 0x17a   :  { %v283_v48 = vsel %vm122_vm1, %v277_v46, -inf }
 0x17f   :  { %v278_v32 = vpop.f32.mrf.mxu1 }
 0x188   :  { %v253_v34 = vpop.f32.mrf.mxu0 }
 0x189   :  { %v254_v35 = vadd.f32 %v2198_v33, %v253_v34 }
 0x18b   :  { %v280_v36 = vsel %vm122_vm1, %v254_v35, -inf }
 0x18c   :  { %281 = vmax.xlane.f32.xlu0 %v280_v36 }
 0x18d   :  { %v138_v37 = vpop.f32.mrf.mxu2 }
 0x18e   :  { %v139_v38 = vadd.f32 %v2198_v33, %v138_v37 }
 0x190   :  { %v255_v39 = vpop.f32.mrf.mxu0  ;;  %v166_v40 = vsel %vm122_vm1, %v139_v38, -inf }
 0x191   :  { %167 = vmax.xlane.f32.xlu2 %v166_v40 }
 0x195   :  { %v140_v41 = vpop.f32.mrf.mxu2 }
 0x19d   :  { %v162_v43 = vpop.f32.mrf.mxu2 }
 0x19e   :  { %v163_v44 = vadd.f32 %v2207_v42, %v162_v43 }
 0x1a0   :  { %389 = vrot.lane.b32.xlu0 %v2168_v13, %s2077_s11  ;;  %v169_v45 = vsel %vm122_vm1, %v163_v44, -inf }
 0x1a1   :  { %170 = vmax.xlane.f32.xlu2 %v169_v45 }
 0x1a5   :  { %v164_v47 = vpop.f32.mrf.mxu2 }
 0x1a9   :  { %284 = vmax.xlane.f32.xlu2 %v283_v48 }
 0x1c1   :  { %190 = vrot.lane.b32.xlu2 %v2168_v13, %s2078_s12 }
 0x1c9   :  { %212 = vrot.lane.b32.xlu2 %v2174_v18, %s2078_s12 }
 0x1ff   :  { %v282_v49 = vpop.xlane.xlu0 %281 }
 0x200   :  { %v286_v50 = vsub.f32 %v254_v35, %v282_v49 }
 0x202   :  { %v288_v51 = vmul.f32 1.442695, %v286_v50 }
 0x204   :  { %1955 = vpow2.f32 %v288_v51  ;;  %v168_v52 = vpop.xlane.xlu2 %167 }
 0x205   :  { %v172_v53 = vsub.f32 %v139_v38, %v168_v52 }
 0x207   :  { %v174_v54 = vmul.f32 1.442695, %v172_v53  ;;  %v48_v53 = vld [vmem:[%s2591_s4] sm:$0xf] }
 0x209   :  { %1957 = vpow2.f32 %v174_v54  ;;  %v371_v54 = vsel %vm195_vm2, %v48_v53, 0 }
 0x20a   :  { %v1956_v55 = vpop.eup %1955  ;;  %380 = vmatpush.bf16.msrb.mxu1 %v371_v54 }
 0x20b   :  { %v292_v56 = vsel %vm122_vm1, %v1956_v55, 0.0 }
 0x20c   :  { %293 = vadd.xlane.f32.xlu1 %v292_v56 }
 0x20f   :  { %v1958_v57 = vpop.eup %1957 }
 0x210   :  { %v178_v58 = vsel %vm122_vm1, %v1958_v57, 0.0 }
 0x211   :  { %179 = vadd.xlane.f32.xlu0 %v178_v58 }
 0x212   :  { %v390_v59 = vpop.permute.xlu0 %389 }
 0x213   :  { %v395_v60 = vsel %vm122_vm1, %v390_v59, 0 }
 0x214   :  { %404 = vmatpush.bf16.xpose.msrb.mxu2 %v395_v60  ;;  %v171_v61 = vpop.xlane.xlu2 %170 }
 0x215   :  { %v173_v9 = vsub.f32 %v163_v44, %v171_v61 }
 0x217   :  { %v176_v10 = vmul.f32 1.442695, %v173_v9 }
 0x21c   :  { %v285_v62 = vpop.xlane.xlu2 %284 }
 0x21d   :  { %v287_v63 = vsub.f32 %v277_v46, %v285_v62 }
 0x21f   :  { %v290_v0 = vmul.f32 1.442695, %v287_v63 }
 0x221   :  { %1959 = vpow2.f32 %v290_v0 }
 0x222   :  { %1961 = vpow2.f32 %v176_v10 }
 0x224   :  { %v191_v1 = vpop.permute.xlu2 %190 }
 0x225   :  { %387 = vrot.lane.b32.xlu1 %v2168_v13, %s2079_s13  ;;  %325 = vrot.lane.b32.xlu0 %v2174_v18, %s2076_s26  ;;  %v197_v2 = vsel %vm195_vm2, %v191_v1, 0 }
 0x226   :  { %206 = vmatpush.bf16.msra.mxu3 %v197_v2 }
 0x227   :  { %v1960_v3 = vpop.eup %1959 }
 0x228   :  { %v295_v4 = vsel %vm122_vm1, %v1960_v3, 0.0  ;;  %v1962_v11 = vpop.eup %1961 }
 0x229   :  { %296 = vadd.xlane.f32.xlu2 %v295_v4  ;;  %v181_v12 = vsel %vm122_vm1, %v1962_v11, 0.0 }
 0x22c   :  { %v213_v7 = vpop.permute.xlu2 %212 }
 0x22d   :  { %410 = vrot.lane.b32.xlu0 %v2174_v18, %s2079_s13  ;;  %v218_v8 = vsel %vm195_vm2, %v213_v7, 0 }
 0x22e   :  { %227 = vmatpush.bf16.msrb.mxu3 %v218_v8 }
 0x241   :  { %457 = vrot.lane.b32.xlu2 %v2168_v13, %s2080_s14 }
 0x249   :  { %524 = vrot.lane.b32.xlu2 %v2168_v13, %s2081_s15 }
 0x24f   :  { %182 = vadd.xlane.f32.xlu1 %v181_v12 }
 0x251   :  { %547 = vrot.lane.b32.xlu2 %v2174_v18, %s2081_s15 }
 0x268   :  { %412 = vrot.lane.b32.xlu1 %v2174_v18, %s2077_s11 }
 0x27f   :  { %v294_v14 = vpop.xlane.xlu1 %293 }
 0x280   :  { %1963 = vrcp.f32 %v294_v14 }
 0x284   :  { %v180_v15 = vpop.xlane.xlu0 %179 }
 0x285   :  { %1965 = vrcp.f32 %v180_v15 }
 0x286   :  { %v1964_v19 = vpop.eup %1963 }
 0x287   :  { %v300_v20 = vmul.f32 %v1964_v19, %v1956_v55 }
 0x289   :  { %v302_v21 = vpack.c.bf16 %v300_v20, %v300_v20 }
 0x28b   :  { %v1966_v22 = vpop.eup %1965  ;;  %1754 = vmatmul.msk.bf16.vlgmr.msra.gmra.mxu2 %vm122_vm1, %v302_v21 }
 0x28c   :  { %v186_v23 = vmul.f32 %v1966_v22, %v1958_v57 }
 0x28e   :  { %v188_v24 = vpack.c.bf16 %v186_v23, %v186_v23 }
 0x290   :  { %1750 = vmatmul.msk.bf16.vlgmr.msra.gmra.mxu3 %vm122_vm1, %v188_v24 }
 0x297   :  { %v326_v25 = vpop.permute.xlu0 %325  ;;  %v388_v27 = vpop.permute.xlu1 %387 }
 0x298   :  { %v331_v26 = vsel %vm195_vm2, %v326_v25, 0 }
 0x299   :  { %340 = vmatpush.bf16.msra.mxu3 %v331_v26 }
 0x29b   :  { %1758 = vmatmul.msk.bf16.vlgmr.msrb.gmra.mxu2 %vm122_vm1, %v388_v27 }
 0x29c   :  { %v297_v28 = vpop.xlane.xlu2 %296 }
 0x29f   :  { %v411_v44 = vpop.permute.xlu0 %410 }
 0x2a4   :  { %v458_v29 = vpop.permute.xlu2 %457 }
 0x2a5   :  { %v463_v30 = vsel %vm195_vm2, %v458_v29, 0 }
 0x2a6   :  { %472 = vmatpush.bf16.msrb.mxu0 %v463_v30 }
 0x2ac   :  { %v525_v39 = vpop.permute.xlu2 %524 }
 0x2ad   :  { %v530_v43 = vsel %vm122_vm1, %v525_v39, 0 }
 0x2b4   :  { %v548_v58 = vpop.permute.xlu2 %547 }
 0x2b5   :  { %v553_v61 = vsel %vm122_vm1, %v548_v58, 0 }
 0x2c2   :  { %v183_v31 = vpop.xlane.xlu1 %182 }
 0x2c3   :  { %1967 = vrcp.f32 %v183_v31  ;;  %v50_v31 = vld [vmem:[%s2591_s4 + $0x8] sm:$0xf] }
 0x2c4   :  { %1969 = vrcp.f32 %v297_v28 }
 0x2c9   :  { %v1968_v32 = vpop.eup %1967 }
 0x2ca   :  { %v187_v34 = vmul.f32 %v1968_v32, %v1962_v11  ;;  %v1970_v36 = vpop.eup %1969  ;;  %v504_v32 = vsel %vm195_vm2, %v50_v31, 0 }
 0x2cb   :  { %v301_v37 = vmul.f32 %v1970_v36, %v1960_v3  ;;  %513 = vmatpush.bf16.msra.mxu2 %v504_v32 }
 0x2cc   :  { %v189_v35 = vpack.c.bf16 %v187_v34, %v187_v34 }
 0x2cd   :  { %v303_v41 = vpack.c.bf16 %v301_v37, %v301_v37 }
 0x2ce   :  { %1751 = vmatmul.msk.bf16.vlgmr.msrb.gmra.mxu3 %vm122_vm1, %v189_v35 }
 0x2da   :  { %v413_v38 = vpop.permute.xlu1 %412 }
 0x2db   :  { %v418_v40 = vsel %vm122_vm1, %v413_v38, 0 }
 0x2dc   :  { %427 = vmatpush.bf16.xpose.msrb.mxu3 %v418_v40 }
 0x2de   :  { %1755 = vmatmul.msk.bf16.vlgmr.msra.gmra.mxu3 %vm122_vm1, %v303_v41 }
 0x2e4   :  { %539 = vmatpush.bf16.xpose.msra.mxu3 %v530_v43 }
 0x2ee   :  { %1759 = vmatmul.msk.bf16.vlgmr.msrb.gmra.mxu3 %vm122_vm1, %v411_v44 }
 0x30e   :  { %v321_v45 = vpop.f32.mrf.mxu2 }
 0x313   :  { %v208_v46 = vpop.f32.mrf.mxu3 }
 0x316   :  { %v323_v47 = vpop.f32.mrf.mxu2 }
 0x31b   :  { %v210_v48 = vpop.f32.mrf.mxu3 }
 0x31e   :  { %v406_v49 = vpop.f32.mrf.mxu2 }
 0x31f   :  { %v407_v50 = vadd.f32 %v2198_v33, %v406_v49 }
 0x321   :  { %v433_v51 = vsel %vm122_vm1, %v407_v50, -inf }
 0x322   :  { %434 = vmax.xlane.f32.xlu0 %v433_v51 }
 0x326   :  { %v408_v52 = vpop.f32.mrf.mxu2 }
 0x336   :  { %522 = vrot.lane.b32.xlu0 %v2168_v13, %s2082_s20 }
 0x351   :  { %v229_v55 = vpop.f32.mrf.mxu3 }
 0x352   :  { %v233_v56 = vpack.c.bf16 %v229_v55, %v208_v46 }
 0x354   :  { %1757 = vmatmul.msk.bf16.vlgmr.msrb.gmra.mxu1 %vm122_vm1, %v233_v56 }
 0x359   :  { %v231_v57 = vpop.f32.mrf.mxu3 }
 0x361   :  { %v342_v59 = vpop.f32.mrf.mxu3 }
 0x362   :  { %v346_v60 = vpack.c.bf16 %v342_v59, %v321_v45 }
 0x364   :  { %1756 = vmatmul.msk.bf16.vlgmr.msra.gmra.mxu0 %vm122_vm1, %v346_v60 }
 0x365   :  { %562 = vmatpush.bf16.xpose.msra.mxu0 %v553_v61 }
 0x369   :  { %v344_v62 = vpop.f32.mrf.mxu3 }
 0x371   :  { %v429_v63 = vpop.f32.mrf.mxu3 }
 0x372   :  { %v430_v0 = vadd.f32 %v2207_v42, %v429_v63 }
 0x374   :  { %v436_v1 = vsel %vm122_vm1, %v430_v0, -inf }
 0x375   :  { %437 = vmax.xlane.f32.xlu2 %v436_v1 }
 0x379   :  { %v431_v2 = vpop.f32.mrf.mxu3 }
 0x395   :  { %v435_v3 = vpop.xlane.xlu0 %434 }
 0x396   :  { %v439_v4 = vsub.f32 %v407_v50, %v435_v3 }
 0x398   :  { %v441_v7 = vmul.f32 1.442695, %v439_v4 }
 0x39a   :  { %1971 = vpow2.f32 %v441_v7 }
 0x3a0   :  { %v1972_v8 = vpop.eup %1971 }
 0x3a1   :  { %v445_v9 = vsel %vm122_vm1, %v1972_v8, 0.0 }
 0x3a2   :  { %446 = vadd.xlane.f32.xlu1 %v445_v9 }
 0x3a8   :  { %v523_v10 = vpop.permute.xlu0 %522 }
 0x3a9   :  { %1763 = vmatmul.msk.bf16.vlgmr.msra.gmra.mxu3 %vm122_vm1, %v523_v10 }
 0x3bb   :  { %545 = vrot.lane.b32.xlu1 %v2174_v18, %s2082_s20 }
 0x3c3   :  { %478 = vrot.lane.b32.xlu1 %v2174_v18, %s2080_s14 }
 0x3d1   :  { %v382_v11 = vpop.f32.mrf.mxu1 }
 0x3d9   :  { %v384_v53 = vpop.f32.mrf.mxu1 }
 0x3e1   :  { %v362_v12 = vpop.f32.mrf.mxu0 }
 0x3e2   :  { %v2273_v14 = vadd.f32 %v382_v11, %v362_v12 }
 0x3e8   :  { %v438_v15 = vpop.xlane.xlu2 %437 }
 0x3e9   :  { %v440_v16 = vsub.f32 %v430_v0, %v438_v15  ;;  %v364_v40 = vpop.f32.mrf.mxu0 }
 0x3eb   :  { %v443_v17 = vmul.f32 1.442695, %v440_v16 }
 0x3ed   :  { %1973 = vpow2.f32 %v443_v17 }
 0x3f3   :  { %v1974_v19 = vpop.eup %1973 }
 0x3f4   :  { %v448_v20 = vsel %vm122_vm1, %v1974_v19, 0.0 }
 0x3f5   :  { %449 = vadd.xlane.f32.xlu0 %v448_v20 }
 0x409   :  { %613 = vrot.lane.b32.xlu0 %v2174_v18, %s2083_s21 }
 0x415   :  { %v447_v21 = vpop.xlane.xlu1 %446 }
 0x416   :  { %1975 = vrcp.f32 %v447_v21  ;;  %v2308_v21 = vld [vmem:[%s2595_s8] sm:$0x3f] }
 0x41c   :  { %v1976_v22 = vpop.eup %1975 }
 0x41d   :  { %v453_v23 = vmul.f32 %v1976_v22, %v1972_v8 }
 0x41f   :  { %v455_v24 = vpack.c.bf16 %v453_v23, %v453_v23 }
 0x421   :  { %1760 = vmatmul.msk.bf16.vlgmr.msrb.gmra.mxu0 %vm122_vm1, %v455_v24  ;;  %v659_v24 = vperm.slane %v2308_v21, 0 }
 0x42c   :  { %v541_v25 = vpop.f32.mrf.mxu3 }
 0x42d   :  { %v542_v26 = vadd.f32 %v2198_v33, %v541_v25  ;;  %v546_v27 = vpop.permute.xlu1 %545 }
 0x42f   :  { %v568_v28 = vsel %vm122_vm1, %v542_v26, -inf }
 0x430   :  { %569 = vmax.xlane.f32.xlu2 %v568_v28 }
 0x431   :  { %1764 = vmatmul.msk.bf16.vlgmr.msra.gmra.mxu0 %vm122_vm1, %v546_v27 }
 0x434   :  { %v543_v29 = vpop.f32.mrf.mxu3 }
 0x435   :  { %v479_v30 = vpop.permute.xlu1 %478 }
 0x436   :  { %v484_v18 = vsel %vm195_vm2, %v479_v30, 0 }
 0x437   :  { %493 = vmatpush.bf16.msra.mxu1 %v484_v18 }
 0x468   :  { %v450_v34 = vpop.xlane.xlu0 %449 }
 0x469   :  { %1977 = vrcp.f32 %v450_v34 }
 0x46f   :  { %v1978_v35 = vpop.eup %1977 }
 0x470   :  { %v454_v36 = vmul.f32 %v1978_v35, %v1974_v19  ;;  %v2084_v35 = vmov 32.0  }
 0x472   :  { %v456_v37 = vpack.c.bf16 %v454_v36, %v454_v36 }
 0x474   :  { %1761 = vmatmul.msk.bf16.vlgmr.msra.gmra.mxu1 %vm122_vm1, %v456_v37 }
 0x47b   :  { %v614_v38 = vpop.permute.xlu0 %613 }
 0x47c   :  { %v619_v39 = vsel %vm195_vm2, %v614_v38, 0 }
 0x47d   :  { %628 = vmatpush.bf16.msrb.mxu2 %v619_v39 }
 0x49e   :  { %v474_v41 = vpop.f32.mrf.mxu0 }
 0x4a3   :  { %v570_v43 = vpop.xlane.xlu2 %569 }
 0x4a4   :  { %v574_v44 = vsub.f32 %v542_v26, %v570_v43  ;;  %v385_v26 = vadd.f32 %v384_v53, %v364_v40 }
 0x4a6   :  { %v576_v45 = vmul.f32 1.442695, %v574_v44  ;;  %v476_v46 = vpop.f32.mrf.mxu0 }
 0x4a8   :  { %1979 = vpow2.f32 %v576_v45 }
 0x4ae   :  { %v1980_v47 = vpop.eup %1979  ;;  %v564_v48 = vpop.f32.mrf.mxu0 }
 0x4af   :  { %v565_v49 = vadd.f32 %v2207_v42, %v564_v48  ;;  %v580_v50 = vsel %vm122_vm1, %v1980_v47, 0.0 }
 0x4b0   :  { %581 = vadd.xlane.f32.xlu2 %v580_v50 }
 0x4b1   :  { %v571_v51 = vsel %vm122_vm1, %v565_v49, -inf }
 0x4b2   :  { %572 = vmax.xlane.f32.xlu1 %v571_v51  ;;  %v1913_v51 = vld [vmem:[%s2592_s5 + $0x8] sm:$0xff] }
 0x4b3   :  { %744 = vmatpush.bf16.msrb.mxu0 %v1913_v51 }
 0x4b6   :  { %v566_v52 = vpop.f32.mrf.mxu0 }
 0x4f1   :  { %v495_v54 = vpop.f32.mrf.mxu1 }
 0x4f2   :  { %v499_v55 = vpack.c.bf16 %v495_v54, %v474_v41 }
 0x4f4   :  { %1762 = vmatmul.msk.bf16.vlgmr.msra.gmra.mxu2 %vm122_vm1, %v499_v55  ;;  %v1912_v55 = vld [vmem:[%s2592_s5] sm:$0xff] }
 0x4f5   :  { %745 = vmatpush.bf16.msrb.mxu0 %v1912_v55 }
 0x4f9   :  { %v497_v56 = vpop.f32.mrf.mxu1 }
 0x523   :  { %v582_v0 = vpop.xlane.xlu2 %581 }
 0x525   :  { %v573_v57 = vpop.xlane.xlu1 %572 }
 0x526   :  { %v575_v58 = vsub.f32 %v565_v49, %v573_v57 }
 0x528   :  { %v578_v59 = vmul.f32 1.442695, %v575_v58 }
 0x52a   :  { %1981 = vpow2.f32 %v578_v59 }
 0x52b   :  { %1983 = vrcp.f32 %v582_v0 }
 0x530   :  { %v1982_v60 = vpop.eup %1981 }
 0x531   :  { %v583_v61 = vsel %vm122_vm1, %v1982_v60, 0.0  ;;  %v1984_v2 = vpop.eup %1983 }
 0x532   :  { %584 = vadd.xlane.f32.xlu2 %v583_v61  ;;  %v588_v4 = vmul.f32 %v1984_v2, %v1980_v47 }
 0x534   :  { %v590_v11 = vpack.c.bf16 %v588_v4, %v588_v4 }
 0x54a   :  { %592 = vrot.lane.b32.xlu2 %v2168_v13, %s2083_s21  ;;  %v51_v13 = vld [vmem:[%s2591_s4 + $0xc] sm:$0xf] }
 0x54b   :  { %v639_v12 = vsel %vm195_vm2, %v51_v13, 0 }
 0x54c   :  { %648 = vmatpush.bf16.msrb.mxu3 %v639_v12  ;;  %v716_v12 = vperm.slane %v2308_v21, 2 }
 0x577   :  { %v515_v62 = vpop.f32.mrf.mxu2 }
 0x578   :  { %v520_v63 = vadd.f32 %v515_v62, %v2273_v14 }
 0x57f   :  { %v517_v14 = vpop.f32.mrf.mxu2 }
 0x580   :  { %v521_v28 = vadd.f32 %v517_v14, %v385_v26  ;;  %v1917_v26 = vld [vmem:[%s2593_s6 + $0x18] sm:$0xff] }
 0x5a5   :  { %v585_v1 = vpop.xlane.xlu2 %584 }
 0x5a6   :  { %1985 = vrcp.f32 %v585_v1 }
 0x5a7   :  { %1987 = vrcp.f32 %v2084_v35 }
 0x5ac   :  { %v1986_v3 = vpop.eup %1985 }
 0x5ad   :  { %v589_v7 = vmul.f32 %v1986_v3, %v1982_v60  ;;  %v593_v8 = vpop.permute.xlu2 %592  ;;  %v1988_v36 = vpop.eup %1987 }
 0x5ae   :  { %v598_v9 = vsel %vm195_vm2, %v593_v8, 0  ;;  %v669_v37 = vmul.f32 32.0, %v1988_v36  ;;  %vm673_vm3 = vweird.f32 %v1988_v36 }
 0x5af   :  { %v591_v10 = vpack.c.bf16 %v589_v7, %v589_v7  ;;  %607 = vmatpush.bf16.msrb.mxu1 %v598_v9  ;;  %v713_v9 = vperm.slane %v2308_v21, 1 }
 0x5b0   :  { %v670_v38 = vsub.f32 1.0, %v669_v37 }
 0x5b1   :  { %1766 = vmatmul.msk.bf16.vlgmr.msrb.gmra.mxu2 %vm122_vm1, %v591_v10 }
 0x5b2   :  { %1765 = vmatmul.msk.bf16.vlgmr.msrb.gmra.mxu1 %vm122_vm1, %v590_v11 }
 0x62f   :  { %v609_v15 = vpop.f32.mrf.mxu1 }
 0x634   :  { %v630_v16 = vpop.f32.mrf.mxu2 }
 0x635   :  { %v634_v17 = vpack.c.bf16 %v630_v16, %v609_v15 }
 0x637   :  { %v611_v19 = vpop.f32.mrf.mxu1  ;;  %1767 = vmatmul.msk.bf16.vlgmr.msrb.gmra.mxu3 %vm122_vm1, %v634_v17 }
 0x63c   :  { %v632_v20 = vpop.f32.mrf.mxu2 }
 0x6ba   :  { %v650_v22 = vpop.f32.mrf.mxu3 }
 0x6bb   :  { %v655_v23 = vadd.f32 %v650_v22, %v520_v63  ;;  %v1921_v22 = vld [vmem:[%s2593_s6 + $0x38] sm:$0xff] }
 0x6bc   :  { %820 = vmatpush.bf16.msra.mxu1 %v1921_v22 }
 0x6bd   :  { %v657_v25 = vadd.f32 %v655_v23, %v2158_v5  ;;  %v671_v5 = vmul.f32 %v1988_v36, %v670_v38  ;;  %v1920_v23 = vld [vmem:[%s2593_s6 + $0x30] sm:$0xff] }
 0x6bf   :  { %v660_v27 = vadd.f32 %v659_v24, %v657_v25  ;;  %v672_v39 = vadd.f32 %v1988_v36, %v671_v5  ;;  %v1918_v25 = vld [vmem:[%s2593_s6 + $0x20] sm:$0xff] }
 0x6c0   :  { %821 = vmatpush.bf16.msra.mxu1 %v1920_v23 }
 0x6c1   :  { %v662_v29 = vsel %vm91_vm0, %v660_v27, 0.0  ;;  %v2315_v40 = vsel %vm673_vm3, %v1988_v36, %v672_v39 }
 0x6c2   :  { %663 = vadd.xlane.f32.xlu1 %v662_v29  ;;  %v652_v30 = vpop.f32.mrf.mxu3  ;;  %v1952_v29 = vld [vmem:[%s2596_s9] ss:$0 sm:$0xff] }
 0x6c3   :  { %v656_v18 = vadd.f32 %v652_v30, %v521_v28  ;;  %v1915_v28 = vld [vmem:[%s2593_s6 + $0x8] sm:$0xff] }
 0x6c5   :  { %v658_v31 = vadd.f32 %v656_v18, %v2160_v6  ;;  %v1914_v18 = vld [vmem:[%s2593_s6] sm:$0xff] }
 0x6c7   :  { %v661_v32 = vadd.f32 %v659_v24, %v658_v31  ;;  %v1919_v24 = vld [vmem:[%s2593_s6 + $0x28] sm:$0xff] }
 0x6c8   :  { %822 = vmatpush.bf16.msra.mxu1 %v1919_v24 }
 0x6c9   :  { %v665_v34 = vsel %vm91_vm0, %v661_v32, 0.0 }
 0x6ca   :  { %666 = vadd.xlane.f32.xlu0 %v665_v34 }
 0x6cc   :  { %823 = vmatpush.bf16.msra.mxu1 %v1918_v25 }
 0x6d0   :  { %824 = vmatpush.bf16.msra.mxu1 %v1917_v26 }
 0x735   :  { %v664_v41 = vpop.xlane.xlu1 %663 }
 0x736   :  { %v675_v43 = vmul.f32 %v2315_v40, %v664_v41 }
 0x738   :  { %v677_v44 = vsub.f32 %v660_v27, %v675_v43  ;;  %v1916_v27 = vld [vmem:[%s2593_s6 + $0x10] sm:$0xff] }
 0x739   :  { %825 = vmatpush.bf16.msra.mxu1 %v1916_v27 }
 0x73a   :  { %v679_v45 = vmul.f32 %v677_v44, %v677_v44 }
 0x73c   :  { %v681_v6 = vsel %vm91_vm0, %v679_v45, 0.0 }
 0x73d   :  { %682 = vadd.xlane.f32.xlu1 %v681_v6  ;;  %v667_v46 = vpop.xlane.xlu0 %666  ;;  %826 = vmatpush.bf16.msra.mxu1 %v1915_v28 }
 0x73e   :  { %v676_v47 = vmul.f32 %v2315_v40, %v667_v46 }
 0x740   :  { %v678_v48 = vsub.f32 %v661_v32, %v676_v47 }
 0x741   :  { %827 = vmatpush.bf16.msra.mxu1 %v1914_v18 }
 0x742   :  { %v680_v49 = vmul.f32 %v678_v48, %v678_v48 }
 0x744   :  { %v684_v50 = vsel %vm91_vm0, %v680_v49, 0.0 }
 0x745   :  { %685 = vadd.xlane.f32.xlu1 %v684_v50 }
 0x7b0   :  { %v683_v52 = vpop.xlane.xlu1 %682 }
 0x7b1   :  { %v687_v53 = vmul.f32 %v683_v52, %v2315_v40 }
 0x7b3   :  { %v689_v54 = vadd.f32 1e-05, %v687_v53 }
 0x7b5   :  { %1989 = vrsqrt.f32 %v689_v54  ;;  %vm697_vm5 = vweird.f32 %v689_v54 }
 0x7b8   :  { %v686_v56 = vpop.xlane.xlu1 %685 }
 0x7b9   :  { %v688_v57 = vmul.f32 %v686_v56, %v2315_v40 }
 0x7bb   :  { %v1990_v58 = vpop.eup %1989  ;;  %v690_v59 = vadd.f32 1e-05, %v688_v57 }
 0x7bc   :  { %v692_v60 = vmul.f32 %v1990_v58, %v689_v54  ;;  %vm698_vm4 = vweird.f32 %v1990_v58  ;;  %v771_v54 = vperm.slane %v2308_v21, 3 }
 0x7bd   :  { %1991 = vrsqrt.f32 %v690_v59  ;;  %vm699_vm6 = vmor %vm697_vm5, %vm698_vm4  ;;  %vm707_vm8 = vweird.f32 %v690_v59 }
 0x7be   :  { %v693_v61 = vmul.f32 %v1990_v58, %v692_v60 }
 0x7c0   :  { %v694_v62 = vmul.f32 0.5, %v693_v61 }
 0x7c2   :  { %v695_v63 = vsub.f32 1.5, %v694_v62 }
 0x7c3   :  { %v1992_v0 = vpop.eup %1991 }
 0x7c4   :  { %v696_v1 = vmul.f32 %v1990_v58, %v695_v63  ;;  %v702_v2 = vmul.f32 %v1992_v0, %v690_v59  ;;  %vm708_vm7 = vweird.f32 %v1992_v0 }
 0x7c5   :  { %vm709_vm9 = vmor %vm707_vm8, %vm708_vm7 }
 0x7c6   :  { %v703_v3 = vmul.f32 %v1992_v0, %v702_v2  ;;  %v700_v4 = vsel %vm699_vm6, %v1990_v58, %v696_v1 }
 0x7c7   :  { %v711_v10 = vmul.f32 %v700_v4, %v677_v44 }
 0x7c8   :  { %v704_v7 = vmul.f32 0.5, %v703_v3 }
 0x7c9   :  { %v714_v14 = vmul.f32 %v713_v9, %v711_v10 }
 0x7ca   :  { %v705_v8 = vsub.f32 1.5, %v704_v7 }
 0x7cb   :  { %v717_v17 = vadd.f32 %v716_v12, %v714_v14 }
 0x7cc   :  { %v706_v11 = vmul.f32 %v1992_v0, %v705_v8 }
 0x7ce   :  { %v710_v13 = vsel %vm709_vm9, %v1992_v0, %v706_v11  ;;  %v1923_v11 = vld [vmem:[%s2590_s3 + $0x18] sm:$0xff] }
 0x7cf   :  { %v712_v15 = vmul.f32 %v710_v13, %v678_v48  ;;  %949 = vmatpush.bf16.msra.mxu2 %v1923_v11 }
 0x7d1   :  { %v715_v16 = vmul.f32 %v713_v9, %v712_v15  ;;  %v1922_v15 = vld [vmem:[%s2590_s3 + $0x10] sm:$0xff] }
 0x7d3   :  { %v718_v19 = vadd.f32 %v716_v12, %v715_v16  ;;  %950 = vmatpush.bf16.msra.mxu2 %v1922_v15 }
 0x7d5   :  { %v719_v20 = vpack.c.bf16 %v718_v19, %v717_v17 }
 0x7d7   :  { %1776 = vmatmul.msk.bf16.vlgmr.msrb.gmra.mxu0 %vm91_vm0, %v719_v20 }
 0x854   :  { %v747_v30 = vpop.f32.mrf.mxu0 }
 0x855   :  { %v748_v31 = vadd.f32 %v1952_v29, %v747_v30 }
 0x857   :  { %v752_v32 = vmul.f32 %v748_v31, %v748_v31 }
 0x859   :  { %v754_v34 = vmul.f32 %v752_v32, %v748_v31  ;;  %v880_v32 = vperm.slane %v2308_v21, 4 }
 0x85b   :  { %v756_v35 = vmul.f32 0.044715, %v754_v34 }
 0x85c   :  { %v749_v36 = vpop.f32.mrf.mxu0 }
 0x85d   :  { %v758_v37 = vadd.f32 %v756_v35, %v748_v31  ;;  %v750_v38 = vadd.f32 %v1952_v29, %v749_v36 }
 0x85f   :  { %v760_v5 = vmul.f32 0.7978846, %v758_v37  ;;  %v753_v39 = vmul.f32 %v750_v38, %v750_v38  ;;  %v883_v37 = vperm.slane %v2308_v21, 5 }
 0x861   :  { %v755_v41 = vmul.f32 %v753_v39, %v750_v38  ;;  %1993 = vtanh.f32 %v760_v5 }
 0x863   :  { %v757_v43 = vmul.f32 0.044715, %v755_v41 }
 0x865   :  { %v759_v44 = vadd.f32 %v757_v43, %v750_v38 }
 0x867   :  { %v761_v45 = vmul.f32 0.7978846, %v759_v44  ;;  %v1994_v6 = vpop.eup %1993 }
 0x868   :  { %v764_v46 = vadd.f32 1.0, %v1994_v6 }
 0x869   :  { %1995 = vtanh.f32 %v761_v45  ;;  %v1953_v45 = vld [vmem:[%s2594_s7 + $0x1] ss:$0 sm:$0xff] }
 0x86a   :  { %v766_v48 = vmul.f32 0.5, %v764_v46 }
 0x86c   :  { %v768_v51 = vmul.f32 %v766_v48, %v748_v31 }
 0x86f   :  { %v1996_v47 = vpop.eup %1995 }
 0x870   :  { %v765_v49 = vadd.f32 1.0, %v1996_v47 }
 0x872   :  { %v767_v50 = vmul.f32 0.5, %v765_v49 }
 0x874   :  { %v769_v52 = vmul.f32 %v767_v50, %v750_v38 }
 0x876   :  { %v770_v53 = vpack.c.bf16 %v769_v52, %v768_v51 }
 0x878   :  { %828 = vmatmul.bf16.vlgmr.msra.gmra.mxu1 %v770_v53 }
 0x8f5   :  { %v829_v55 = vpop.f32.mrf.mxu1 }
 0x8f6   :  { %v830_v56 = vadd.f32 %v829_v55, %v771_v54 }
 0x8f8   :  { %v834_v57 = vadd.f32 %v830_v56, %v717_v17 }
 0x8fa   :  { %v836_v58 = vsel %vm91_vm0, %v834_v57, 0.0 }
 0x8fb   :  { %837 = vadd.xlane.f32.xlu2 %v836_v58 }
 0x8fd   :  { %v831_v59 = vpop.f32.mrf.mxu1 }
 0x8fe   :  { %v832_v60 = vadd.f32 %v831_v59, %v771_v54 }
 0x900   :  { %v835_v61 = vadd.f32 %v832_v60, %v718_v19 }
 0x902   :  { %v839_v62 = vsel %vm91_vm0, %v835_v61, 0.0 }
 0x903   :  { %840 = vadd.xlane.f32.xlu1 %v839_v62 }
 0x96e   :  { %v838_v63 = vpop.xlane.xlu2 %837 }
 0x96f   :  { %v842_v0 = vmul.f32 %v838_v63, %v2315_v40 }
 0x971   :  { %v844_v1 = vsub.f32 %v834_v57, %v842_v0 }
 0x973   :  { %v846_v2 = vmul.f32 %v844_v1, %v844_v1 }
 0x975   :  { %v848_v3 = vsel %vm91_vm0, %v846_v2, 0.0 }
 0x976   :  { %v841_v4 = vpop.xlane.xlu1 %840  ;;  %849 = vadd.xlane.f32.xlu1 %v848_v3 }
 0x977   :  { %v843_v7 = vmul.f32 %v841_v4, %v2315_v40 }
 0x979   :  { %v845_v8 = vsub.f32 %v835_v61, %v843_v7 }
 0x97b   :  { %v847_v9 = vmul.f32 %v845_v8, %v845_v8 }
 0x97d   :  { %v851_v10 = vsel %vm91_vm0, %v847_v9, 0.0 }
 0x97e   :  { %852 = vadd.xlane.f32.xlu1 %v851_v10 }
 0x9e9   :  { %v850_v13 = vpop.xlane.xlu1 %849 }
 0x9ea   :  { %v854_v12 = vmul.f32 %v850_v13, %v2315_v40 }
 0x9ec   :  { %v856_v14 = vadd.f32 1e-05, %v854_v12 }
 0x9ee   :  { %1997 = vrsqrt.f32 %v856_v14  ;;  %vm864_vm11 = vweird.f32 %v856_v14 }
 0x9f1   :  { %v853_v16 = vpop.xlane.xlu1 %852 }
 0x9f2   :  { %v855_v17 = vmul.f32 %v853_v16, %v2315_v40 }
 0x9f4   :  { %v1998_v19 = vpop.eup %1997  ;;  %v857_v20 = vadd.f32 1e-05, %v855_v17 }
 0x9f5   :  { %v859_v22 = vmul.f32 %v1998_v19, %v856_v14  ;;  %vm865_vm10 = vweird.f32 %v1998_v19 }
 0x9f6   :  { %1999 = vrsqrt.f32 %v857_v20  ;;  %vm866_vm12 = vmor %vm864_vm11, %vm865_vm10  ;;  %vm874_vm14 = vweird.f32 %v857_v20 }
 0x9f7   :  { %v860_v23 = vmul.f32 %v1998_v19, %v859_v22 }
 0x9f9   :  { %v861_v24 = vmul.f32 0.5, %v860_v23 }
 0x9fb   :  { %v862_v25 = vsub.f32 1.5, %v861_v24 }
 0x9fc   :  { %v2000_v26 = vpop.eup %1999 }
 0x9fd   :  { %v863_v27 = vmul.f32 %v1998_v19, %v862_v25  ;;  %v869_v28 = vmul.f32 %v2000_v26, %v857_v20  ;;  %vm875_vm13 = vweird.f32 %v2000_v26 }
 0x9fe   :  { %vm876_vm15 = vmor %vm874_vm14, %vm875_vm13 }
 0x9ff   :  { %v870_v29 = vmul.f32 %v2000_v26, %v869_v28  ;;  %v867_v30 = vsel %vm866_vm12, %v1998_v19, %v863_v27 }
 0xa00   :  { %v878_v34 = vmul.f32 %v867_v30, %v844_v1 }
 0xa01   :  { %v871_v18 = vmul.f32 0.5, %v870_v29 }
 0xa02   :  { %v881_v38 = vmul.f32 %v880_v32, %v878_v34 }
 0xa03   :  { %v872_v31 = vsub.f32 1.5, %v871_v18 }
 0xa04   :  { %v2376_v41 = vadd.f32 %v883_v37, %v881_v38 }
 0xa05   :  { %v873_v35 = vmul.f32 %v2000_v26, %v872_v31 }
 0xa07   :  { %v877_v36 = vsel %vm876_vm15, %v2000_v26, %v873_v35 }
 0xa08   :  { %v879_v5 = vmul.f32 %v877_v36, %v845_v8 }
 0xa0a   :  { %v882_v39 = vmul.f32 %v880_v32, %v879_v5 }
 0xa0c   :  { %v2378_v43 = vadd.f32 %v883_v37, %v882_v39 }
 0xa0e   :  { %v924_v44 = vpack.c.bf16 %v2378_v43, %v2376_v41 }
 0xa10   :  { %1848 = vmatmul.msk.bf16.vlgmr.msra.gmra.mxu2 %vm91_vm0, %v924_v44 }
 0xa93   :  { %v952_v6 = vpop.f32.mrf.mxu2 }
 0xa94   :  { %v953_v46 = vadd.f32 %v1953_v45, %v952_v6 }
 0xa96   :  { %v957_v47 = vpack.c.bf16 %v953_v46, %v953_v46 }
 0xa98   :  { %v960_v21 = vunpack.c.l.b16 %v957_v47 }
 0xa9a   :  { %v2386_v48 = vpack.c.b16 %v960_v21, %v960_v21 }
 0xa9b   :  { %v954_v49 = vpop.f32.mrf.mxu2 }
 0xa9c   :  { %v955_v50 = vadd.f32 %v1953_v45, %v954_v49  ;;  %1076 = vrot.lane.b32.xlu2 %v2386_v48, %s2074_s24  ;;  %962 = vrot.lane.b32.xlu0 %v2386_v48, %s2073_s2 }
 0xa9e   :  { %v958_v51 = vpack.c.bf16 %v955_v50, %v955_v50 }
 0xaa0   :  { %v984_v52 = vunpack.c.l.b16 %v958_v51 }
 0xaa2   :  { %v2392_v53 = vpack.c.b16 %v984_v52, %v984_v52 }
 0xaa4   :  { %986 = vrot.lane.b32.xlu1 %v2392_v53, %s2073_s2  ;;  %1074 = vrot.lane.b32.xlu0 %v2386_v48, %s2075_s25 }
 0xaac   :  { %1099 = vrot.lane.b32.xlu1 %v2392_v53, %s2074_s24  ;;  %1097 = vrot.lane.b32.xlu0 %v2392_v53, %s2075_s25 }
 0xaf6   :  { %v1077_v56 = vpop.permute.xlu2 %1076 }
 0xaf7   :  { %v1082_v59 = vsel %vm122_vm1, %v1077_v56, 0 }
 0xb0e   :  { %v963_v54 = vpop.permute.xlu0 %962 }
 0xb0f   :  { %v968_v55 = vsel %vm122_vm1, %v963_v54, 0 }
 0xb10   :  { %977 = vmatpush.bf16.xpose.msra.mxu3 %v968_v55 }
 0xb16   :  { %v987_v57 = vpop.permute.xlu1 %986  ;;  %v1075_v60 = vpop.permute.xlu0 %1074 }
 0xb17   :  { %v992_v58 = vsel %vm122_vm1, %v987_v57, 0  ;;  %1849 = vmatmul.msk.bf16.vlgmr.msra.gmra.mxu3 %vm122_vm1, %v957_v47 }
 0xb18   :  { %1001 = vmatpush.bf16.xpose.msra.mxu0 %v992_v58 }
 0xb1e   :  { %v1100_v61 = vpop.permute.xlu1 %1099  ;;  %v1098_v63 = vpop.permute.xlu0 %1097 }
 0xb1f   :  { %v1105_v62 = vsel %vm122_vm1, %v1100_v61, 0  ;;  %1850 = vmatmul.msk.bf16.vlgmr.msra.gmra.mxu0 %vm122_vm1, %v958_v51 }
 0xb20   :  { %1091 = vmatpush.bf16.xpose.msrb.mxu0 %v1082_v59  ;;  %1114 = vmatpush.bf16.xpose.msrb.mxu1 %v1105_v62  ;;  %v1814_v59 = vld [vmem:[%s2591_s4 + $0x14] sm:$0xf] }
 0xb27   :  { %1854 = vmatmul.msk.bf16.vlgmr.msrb.gmra.mxu1 %vm122_vm1, %v1098_v63 }
 0xb2f   :  { %1853 = vmatmul.msk.bf16.vlgmr.msrb.gmra.mxu0 %vm122_vm1, %v1075_v60  ;;  %v1191_v60 = vsel %vm195_vm2, %v1814_v59, 0 }
 0xb30   :  { %1200 = vmatpush.bf16.msra.mxu0 %v1191_v60 }
 0xb9a   :  { %v979_v0 = vpop.f32.mrf.mxu3 }
 0xb9b   :  { %v980_v1 = vadd.f32 %v2198_v33, %v979_v0 }
 0xb9c   :  { %v1003_v2 = vpop.f32.mrf.mxu0 }
 0xb9d   :  { %v1007_v3 = vsel %vm122_vm1, %v980_v1, -inf  ;;  %v1004_v14 = vadd.f32 %v2207_v42, %v1003_v2 }
 0xb9e   :  { %1008 = vmax.xlane.f32.xlu1 %v1007_v3 }
 0xb9f   :  { %v1010_v15 = vsel %vm122_vm1, %v1004_v14, -inf }
 0xba2   :  { %v981_v4 = vpop.f32.mrf.mxu3 }
 0xba4   :  { %v1005_v7 = vpop.f32.mrf.mxu0  ;;  %v1116_v8 = vpop.f32.mrf.mxu1 }
 0xba5   :  { %v1117_v29 = vadd.f32 %v2207_v42, %v1116_v8 }
 0xba7   :  { %v1123_v30 = vsel %vm122_vm1, %v1117_v29, -inf }
 0xbac   :  { %v1093_v9 = vpop.f32.mrf.mxu0  ;;  %v1118_v10 = vpop.f32.mrf.mxu1 }
 0xbad   :  { %v1094_v11 = vadd.f32 %v2198_v33, %v1093_v9 }
 0xbaf   :  { %v1120_v13 = vsel %vm122_vm1, %v1094_v11, -inf }
 0xbb0   :  { %1121 = vmax.xlane.f32.xlu2 %v1120_v13 }
 0xbb4   :  { %v1095_v12 = vpop.f32.mrf.mxu0 }
 0xbc8   :  { %1031 = vrot.lane.b32.xlu2 %v2386_v48, %s2078_s12 }
 0xbf1   :  { %1011 = vmax.xlane.f32.xlu2 %v1010_v15  ;;  %v1813_v15 = vld [vmem:[%s2591_s4 + $0x10] sm:$0xf] }
 0xc09   :  { %1052 = vrot.lane.b32.xlu2 %v2392_v53, %s2078_s12 }
 0xc11   :  { %v1009_v16 = vpop.xlane.xlu1 %1008  ;;  %1250 = vrot.lane.b32.xlu2 %v2392_v53, %s2079_s13 }
 0xc12   :  { %v1013_v33 = vsub.f32 %v980_v1, %v1009_v16  ;;  %v1211_v16 = vsel %vm195_vm2, %v1813_v15, 0 }
 0xc13   :  { %1220 = vmatpush.bf16.msra.mxu1 %v1211_v16 }
 0xc14   :  { %v1015_v17 = vmul.f32 1.442695, %v1013_v33 }
 0xc16   :  { %2001 = vpow2.f32 %v1015_v17 }
 0xc1c   :  { %v2002_v19 = vpop.eup %2001 }
 0xc1d   :  { %v1019_v20 = vsel %vm122_vm1, %v2002_v19, 0.0 }
 0xc1e   :  { %1020 = vadd.xlane.f32.xlu0 %v1019_v20 }
 0xc23   :  { %v1122_v22 = vpop.xlane.xlu2 %1121 }
 0xc24   :  { %v1126_v23 = vsub.f32 %v1094_v11, %v1122_v22  ;;  %v2465_v11 = vld [vmem:[%s2588_s1] ss:$0 sm:$0xff] }
 0xc26   :  { %v1128_v24 = vmul.f32 1.442695, %v1126_v23 }
 0xc28   :  { %2003 = vpow2.f32 %v1128_v24 }
 0xc2b   :  { %v1032_v25 = vpop.permute.xlu2 %1031 }
 0xc2c   :  { %v1037_v26 = vsel %vm195_vm2, %v1032_v25, 0 }
 0xc2d   :  { %1046 = vmatpush.bf16.msrb.mxu2 %v1037_v26 }
 0xc2e   :  { %v2004_v27 = vpop.eup %2003 }
 0xc2f   :  { %v1132_v28 = vsel %vm122_vm1, %v2004_v27, 0.0 }
 0xc30   :  { %1133 = vadd.xlane.f32.xlu1 %v1132_v28 }
 0xc32   :  { %1144 = vrot.lane.b32.xlu0 %v2386_v48, %s2076_s26 }
 0xc3a   :  { %1227 = vrot.lane.b32.xlu0 %v2386_v48, %s2079_s13 }
 0xc49   :  { %1229 = vrot.lane.b32.xlu1 %v2386_v48, %s2077_s11 }
 0xc64   :  { %v1012_v18 = vpop.xlane.xlu2 %1011  ;;  %1124 = vmax.xlane.f32.xlu0 %v1123_v30 }
 0xc65   :  { %v1014_v31 = vsub.f32 %v1004_v14, %v1012_v18 }
 0xc67   :  { %v1017_v32 = vmul.f32 1.442695, %v1014_v31 }
 0xc69   :  { %2005 = vpow2.f32 %v1017_v32 }
 0xc6c   :  { %v1053_v34 = vpop.permute.xlu2 %1052 }
 0xc6d   :  { %v1058_v35 = vsel %vm195_vm2, %v1053_v34, 0 }
 0xc6e   :  { %1067 = vmatpush.bf16.msrb.mxu3 %v1058_v35 }
 0xc6f   :  { %v2006_v36 = vpop.eup %2005 }
 0xc70   :  { %v1022_v37 = vsel %vm122_vm1, %v2006_v36, 0.0 }
 0xc73   :  { %1023 = vadd.xlane.f32.xlu1 %v1022_v37 }
 0xc74   :  { %v1251_v26 = vpop.permute.xlu2 %1250 }
 0xc8c   :  { %1165 = vrot.lane.b32.xlu1 %v2392_v53, %s2076_s26 }
 0xc91   :  { %v1021_v38 = vpop.xlane.xlu0 %1020 }
 0xc92   :  { %2007 = vrcp.f32 %v1021_v38 }
 0xc94   :  { %1297 = vrot.lane.b32.xlu1 %v2386_v48, %s2080_s14 }
 0xc98   :  { %v2008_v42 = vpop.eup %2007 }
 0xc99   :  { %v1027_v5 = vmul.f32 %v2008_v42, %v2002_v19 }
 0xc9b   :  { %v1029_v39 = vpack.c.bf16 %v1027_v5, %v1027_v5 }
 0xc9c   :  { %1364 = vrot.lane.b32.xlu1 %v2386_v48, %s2081_s15 }
 0xc9d   :  { %1851 = vmatmul.msk.bf16.vlgmr.msrb.gmra.mxu2 %vm122_vm1, %v1029_v39 }
 0xca3   :  { %v1134_v44 = vpop.xlane.xlu1 %1133 }
 0xca4   :  { %2009 = vrcp.f32 %v1134_v44  ;;  %1387 = vrot.lane.b32.xlu1 %v2392_v53, %s2081_s15  ;;  %v1145_v45 = vpop.permute.xlu0 %1144  ;;  %v2046_v44 = vld [vmem:[%s2588_s1 + $0x1] ss:$0 sm:$0xff]  ;;  %s1727_s15 = sshll.u32 %s2597_s10, 4  ;;  %s1728_s15 = int_to_ptr.hbm [resolvable:$true] %s1727_s15 }
 0xca5   :  { %v1150_v6 = vsel %vm195_vm2, %v1145_v45, 0 }
 0xca6   :  { %1159 = vmatpush.bf16.msra.mxu2 %v1150_v6 }
 0xcaa   :  { %v2010_v46 = vpop.eup %2009 }
 0xcab   :  { %v1140_v47 = vmul.f32 %v2010_v46, %v2004_v27 }
 0xcac   :  { %1362 = vrot.lane.b32.xlu1 %v2386_v48, %s2082_s20  ;;  %v1228_v51 = vpop.permute.xlu0 %1227 }
 0xcad   :  { %v1142_v21 = vpack.c.bf16 %v1140_v47, %v1140_v47 }
 0xcaf   :  { %1855 = vmatmul.msk.bf16.vlgmr.msra.gmra.mxu2 %vm122_vm1, %v1142_v21 }
 0xcb4   :  { %1385 = vrot.lane.b32.xlu1 %v2392_v53, %s2082_s20  ;;  %s2086_s20 = smov 128  }
 0xcbb   :  { %v1230_v49 = vpop.permute.xlu1 %1229 }
 0xcbc   :  { %v1235_v50 = vsel %vm122_vm1, %v1230_v49, 0 }
 0xcbd   :  { %1244 = vmatpush.bf16.xpose.msrb.mxu2 %v1235_v50 }
 0xcc4   :  { %1859 = vmatmul.msk.bf16.vlgmr.msrb.gmra.mxu2 %vm122_vm1, %v1228_v51 }
 0xcd7   :  { %v1125_v52 = vpop.xlane.xlu0 %1124 }
 0xcd8   :  { %v1127_v54 = vsub.f32 %v1117_v29, %v1125_v52 }
 0xcda   :  { %v1130_v55 = vmul.f32 1.442695, %v1127_v54 }
 0xcdc   :  { %2011 = vpow2.f32 %v1130_v55 }
 0xce2   :  { %v2012_v56 = vpop.eup %2011 }
 0xce3   :  { %v1135_v57 = vsel %vm122_vm1, %v2012_v56, 0.0 }
 0xce4   :  { %1136 = vadd.xlane.f32.xlu0 %v1135_v57 }
 0xce6   :  { %v1024_v58 = vpop.xlane.xlu1 %1023 }
 0xce7   :  { %2013 = vrcp.f32 %v1024_v58 }
 0xced   :  { %v2014_v61 = vpop.eup %2013 }
 0xcee   :  { %v1028_v62 = vmul.f32 %v2014_v61, %v2006_v36 }
 0xcf0   :  { %v1030_v63 = vpack.c.bf16 %v1028_v62, %v1028_v62 }
 0xcf2   :  { %1852 = vmatmul.msk.bf16.vlgmr.msrb.gmra.mxu3 %vm122_vm1, %v1030_v63 }
 0xcf8   :  { %1252 = vrot.lane.b32.xlu0 %v2392_v53, %s2077_s11 }
 0xcfe   :  { %v1166_v0 = vpop.permute.xlu1 %1165 }
 0xcff   :  { %v1171_v1 = vsel %vm195_vm2, %v1166_v0, 0 }
 0xd00   :  { %1180 = vmatpush.bf16.msra.mxu3 %v1171_v1 }
 0xd06   :  { %v1298_v2 = vpop.permute.xlu1 %1297 }
 0xd07   :  { %v1303_v3 = vsel %vm195_vm2, %v1298_v2, 0 }
 0xd08   :  { %1312 = vmatpush.bf16.msrb.mxu0 %v1303_v3 }
 0xd0e   :  { %v1365_v22 = vpop.permute.xlu1 %1364 }
 0xd0f   :  { %v1370_v25 = vsel %vm122_vm1, %v1365_v22, 0 }
 0xd16   :  { %v1388_v29 = vpop.permute.xlu1 %1387 }
 0xd17   :  { %v1393_v42 = vsel %vm122_vm1, %v1388_v29, 0 }
 0xd1e   :  { %v1363_v18 = vpop.permute.xlu1 %1362 }
 0xd20   :  { %v1048_v4 = vpop.f32.mrf.mxu2 }
 0xd28   :  { %v1050_v7 = vpop.f32.mrf.mxu2 }
 0xd32   :  { %v1161_v8 = vpop.f32.mrf.mxu2 }
 0xd3a   :  { %v1163_v9 = vpop.f32.mrf.mxu2 }
 0xd47   :  { %v1246_v10 = vpop.f32.mrf.mxu2 }
 0xd48   :  { %v1247_v13 = vadd.f32 %v2465_v11, %v1246_v10 }
 0xd4a   :  { %v1273_v12 = vsel %vm122_vm1, %v1247_v13, -inf }
 0xd4b   :  { %1274 = vmax.xlane.f32.xlu2 %v1273_v12 }
 0xd4f   :  { %v1248_v14 = vpop.f32.mrf.mxu2 }
 0xd57   :  { %v1137_v33 = vpop.xlane.xlu0 %1136 }
 0xd58   :  { %2015 = vrcp.f32 %v1137_v33 }
 0xd5e   :  { %v2016_v17 = vpop.eup %2015 }
 0xd5f   :  { %v1141_v19 = vmul.f32 %v2016_v17, %v2012_v56  ;;  %v1386_v56 = vpop.permute.xlu1 %1385 }
 0xd61   :  { %v1143_v20 = vpack.c.bf16 %v1141_v19, %v1141_v19 }
 0xd63   :  { %1856 = vmatmul.msk.bf16.vlgmr.msra.gmra.mxu3 %vm122_vm1, %v1143_v20 }
 0xd6a   :  { %v1253_v23 = vpop.permute.xlu0 %1252 }
 0xd6b   :  { %v1258_v24 = vsel %vm122_vm1, %v1253_v23, 0 }
 0xd6c   :  { %1267 = vmatpush.bf16.xpose.msrb.mxu3 %v1258_v24 }
 0xd73   :  { %1860 = vmatmul.msk.bf16.vlgmr.msrb.gmra.mxu3 %vm122_vm1, %v1251_v26 }
 0xd74   :  { %1379 = vmatpush.bf16.xpose.msra.mxu3 %v1370_v25 }
 0xd75   :  { %v1069_v27 = vpop.f32.mrf.mxu3 }
 0xd76   :  { %v1073_v28 = vpack.c.bf16 %v1069_v27, %v1048_v4 }
 0xd78   :  { %1858 = vmatmul.msk.bf16.vlgmr.msra.gmra.mxu1 %vm122_vm1, %v1073_v28 }
 0xd7d   :  { %v1071_v30 = vpop.f32.mrf.mxu3 }
 0xd83   :  { %1864 = vmatmul.msk.bf16.vlgmr.msra.gmra.mxu3 %vm122_vm1, %v1363_v18 }
 0xdbe   :  { %v1275_v31 = vpop.xlane.xlu2 %1274 }
 0xdbf   :  { %v1279_v32 = vsub.f32 %v1247_v13, %v1275_v31 }
 0xdc1   :  { %v1281_v34 = vmul.f32 1.442695, %v1279_v32 }
 0xdc3   :  { %2017 = vpow2.f32 %v1281_v34 }
 0xdc9   :  { %v2018_v35 = vpop.eup %2017 }
 0xdca   :  { %v1285_v36 = vsel %vm122_vm1, %v2018_v35, 0.0 }
 0xdcb   :  { %1286 = vadd.xlane.f32.xlu0 %v1285_v36 }
 0xddf   :  { %1318 = vrot.lane.b32.xlu0 %v2392_v53, %s2080_s14 }
 0xde6   :  { %v1182_v37 = vpop.f32.mrf.mxu3 }
 0xde7   :  { %v1186_v38 = vpack.c.bf16 %v1182_v37, %v1161_v8 }
 0xde9   :  { %1857 = vmatmul.msk.bf16.vlgmr.msra.gmra.mxu0 %vm122_vm1, %v1186_v38 }
 0xdea   :  { %1402 = vmatpush.bf16.xpose.msra.mxu0 %v1393_v42 }
 0xdee   :  { %v1184_v5 = vpop.f32.mrf.mxu3 }
 0xdf5   :  { %v1222_v28 = vpop.f32.mrf.mxu1 }
 0xdf6   :  { %v1269_v39 = vpop.f32.mrf.mxu3 }
 0xdf7   :  { %v1270_v45 = vadd.f32 %v2046_v44, %v1269_v39 }
 0xdf9   :  { %v1276_v6 = vsel %vm122_vm1, %v1270_v45, -inf }
 0xdfa   :  { %1277 = vmax.xlane.f32.xlu2 %v1276_v6 }
 0xdfd   :  { %v1224_v29 = vpop.f32.mrf.mxu1 }
 0xdfe   :  { %v1271_v46 = vpop.f32.mrf.mxu3 }
 0xdff   :  { %v1816_v46 = vld [vmem:[%s2591_s4 + $0x1c] sm:$0xf] }
 0xe06   :  { %v1381_v47 = vpop.f32.mrf.mxu3 }
 0xe07   :  { %v1382_v7 = vadd.f32 %v2465_v11, %v1381_v47  ;;  %v1815_v11 = vld [vmem:[%s2591_s4 + $0x18] sm:$0xf]  ;;  %v1479_v47 = vsel %vm195_vm2, %v1816_v46, 0 }
 0xe08   :  { %v1344_v20 = vsel %vm195_vm2, %v1815_v11, 0  ;;  %1488 = vmatpush.bf16.msrb.mxu3 %v1479_v47  ;;  %v1924_v11 = vld [vmem:[%s2592_s5 + $0x10] sm:$0xff]  ;;  %v1933_v46 = vld [vmem:[%s2593_s6 + $0x78] sm:$0xff] }
 0xe09   :  { %v1408_v9 = vsel %vm122_vm1, %v1382_v7, -inf  ;;  %1353 = vmatpush.bf16.msra.mxu2 %v1344_v20  ;;  %v1932_v47 = vld [vmem:[%s2593_s6 + $0x70] sm:$0xff] }
 0xe0e   :  { %v1383_v21 = vpop.f32.mrf.mxu3 }
 0xe3e   :  { %v1287_v49 = vpop.xlane.xlu0 %1286 }
 0xe3f   :  { %2019 = vrcp.f32 %v1287_v49 }
 0xe45   :  { %v2020_v50 = vpop.eup %2019 }
 0xe46   :  { %v1293_v51 = vmul.f32 %v2020_v50, %v2018_v35 }
 0xe48   :  { %v1295_v52 = vpack.c.bf16 %v1293_v51, %v1293_v51 }
 0xe4a   :  { %1861 = vmatmul.msk.bf16.vlgmr.msrb.gmra.mxu0 %vm122_vm1, %v1295_v52 }
 0xe51   :  { %v1319_v54 = vpop.permute.xlu0 %1318 }
 0xe52   :  { %v1324_v55 = vsel %vm195_vm2, %v1319_v54, 0 }
 0xe53   :  { %1333 = vmatpush.bf16.msrb.mxu1 %v1324_v55  ;;  %v2521_v55 = vld [vmem:[%s2595_s8 + $0x8] sm:$0x3f] }
 0xe5a   :  { %1865 = vmatmul.msk.bf16.vlgmr.msra.gmra.mxu0 %vm122_vm1, %v1386_v56 }
 0xe66   :  { %v1202_v62 = vpop.f32.mrf.mxu0 }
 0xe6d   :  { %v1278_v57 = vpop.xlane.xlu2 %1277 }
 0xe6e   :  { %v1280_v58 = vsub.f32 %v1270_v45, %v1278_v57  ;;  %v2494_v63 = vpop.f32.mrf.mxu0 }
 0xe70   :  { %v1283_v59 = vmul.f32 1.442695, %v1280_v58  ;;  %v1499_v58 = vperm.slane %v2521_v55, 0 }
 0xe72   :  { %2021 = vpow2.f32 %v1283_v59 }
 0xe78   :  { %v2022_v60 = vpop.eup %2021 }
 0xe79   :  { %v1288_v61 = vsel %vm122_vm1, %v2022_v60, 0.0 }
 0xe7a   :  { %1289 = vadd.xlane.f32.xlu1 %v1288_v61 }
 0xe93   :  { %1432 = vrot.lane.b32.xlu1 %v2386_v48, %s2083_s21 }
 0xec7   :  { %v1314_v0 = vpop.f32.mrf.mxu0 }
 0xecf   :  { %v1316_v1 = vpop.f32.mrf.mxu0 }
 0xed7   :  { %v1404_v2 = vpop.f32.mrf.mxu0 }
 0xed8   :  { %v1405_v3 = vadd.f32 %v2046_v44, %v1404_v2  ;;  %v1223_v44 = vadd.f32 %v1222_v28, %v1202_v62 }
 0xeda   :  { %v1411_v4 = vsel %vm122_vm1, %v1405_v3, -inf }
 0xedb   :  { %1412 = vmax.xlane.f32.xlu2 %v1411_v4 }
 0xedf   :  { %v1406_v8 = vpop.f32.mrf.mxu0 }
 0xee3   :  { %1409 = vmax.xlane.f32.xlu2 %v1408_v9 }
 0xeed   :  { %v1290_v10 = vpop.xlane.xlu1 %1289 }
 0xeee   :  { %2023 = vrcp.f32 %v1290_v10 }
 0xef4   :  { %v2024_v13 = vpop.eup %2023 }
 0xef5   :  { %v1294_v48 = vmul.f32 %v2024_v13, %v2022_v60  ;;  %v1225_v60 = vadd.f32 %v1224_v29, %v2494_v63 }
 0xef7   :  { %v1296_v12 = vpack.c.bf16 %v1294_v48, %v1294_v48 }
 0xef9   :  { %1862 = vmatmul.msk.bf16.vlgmr.msrb.gmra.mxu1 %vm122_vm1, %v1296_v12 }
 0xf05   :  { %v1433_v14 = vpop.permute.xlu1 %1432 }
 0xf06   :  { %v1438_v15 = vsel %vm195_vm2, %v1433_v14, 0 }
 0xf07   :  { %1447 = vmatpush.bf16.msra.mxu1 %v1438_v15 }
 0xf0b   :  { %1653 = vmatpush.bf16.msrb.mxu1 %v1933_v46 }
 0xf0f   :  { %1654 = vmatpush.bf16.msrb.mxu1 %v1932_v47 }
 0xf4e   :  { %v1413_v16 = vpop.xlane.xlu2 %1412 }
 0xf4f   :  { %v1415_v33 = vsub.f32 %v1405_v3, %v1413_v16 }
 0xf51   :  { %v1418_v17 = vmul.f32 1.442695, %v1415_v33 }
 0xf53   :  { %2025 = vpow2.f32 %v1418_v17 }
 0xf56   :  { %v1410_v19 = vpop.xlane.xlu2 %1409 }
 0xf57   :  { %v1414_v22 = vsub.f32 %v1382_v7, %v1410_v19 }
 0xf59   :  { %v2026_v23 = vpop.eup %2025  ;;  %v1416_v24 = vmul.f32 1.442695, %v1414_v22 }
 0xf5a   :  { %v1423_v25 = vsel %vm122_vm1, %v2026_v23, 0.0 }
 0xf5b   :  { %2027 = vpow2.f32 %v1416_v24  ;;  %1424 = vadd.xlane.f32.xlu2 %v1423_v25 }
 0xf61   :  { %v2028_v26 = vpop.eup %2027 }
 0xf62   :  { %v1420_v27 = vsel %vm122_vm1, %v2028_v26, 0.0 }
 0xf63   :  { %1421 = vadd.xlane.f32.xlu0 %v1420_v27 }
 0xf73   :  { %1453 = vrot.lane.b32.xlu2 %v2392_v53, %s2083_s21  ;;  %s2087_s21 = smov 8  }
 0xf76   :  { %v1335_v30 = vpop.f32.mrf.mxu1 }
 0xf77   :  { %v1339_v18 = vpack.c.bf16 %v1335_v30, %v1314_v0 }
 0xf79   :  { %1863 = vmatmul.msk.bf16.vlgmr.msra.gmra.mxu2 %vm122_vm1, %v1339_v18 }
 0xf7e   :  { %v1337_v31 = vpop.f32.mrf.mxu1 }
 0xfce   :  { %v1425_v32 = vpop.xlane.xlu2 %1424 }
 0xfcf   :  { %2029 = vrcp.f32 %v1425_v32 }
 0xfd5   :  { %v2030_v34 = vpop.eup %2029 }
 0xfd6   :  { %v1429_v35 = vmul.f32 %v2030_v34, %v2026_v23  ;;  %v1454_v36 = vpop.permute.xlu2 %1453  ;;  %v1422_v37 = vpop.xlane.xlu0 %1421 }
 0xfd7   :  { %v1459_v38 = vsel %vm195_vm2, %v1454_v36, 0  ;;  %2031 = vrcp.f32 %v1422_v37 }
 0xfd8   :  { %v1431_v42 = vpack.c.bf16 %v1429_v35, %v1429_v35  ;;  %1468 = vmatpush.bf16.msrb.mxu2 %v1459_v38  ;;  %v1546_v35 = vperm.slane %v2521_v55, 1 }
 0xfdb   :  { %1867 = vmatmul.msk.bf16.vlgmr.msrb.gmra.mxu2 %vm122_vm1, %v1431_v42  ;;  %v1549_v42 = vperm.slane %v2521_v55, 2 }
 0xfdd   :  { %v2032_v5 = vpop.eup %2031 }
 0xfde   :  { %v1428_v53 = vmul.f32 %v2032_v5, %v2028_v26 }
 0xfe0   :  { %v1430_v39 = vpack.c.bf16 %v1428_v53, %v1428_v53 }
 0xfe2   :  { %1866 = vmatmul.msk.bf16.vlgmr.msra.gmra.mxu1 %vm122_vm1, %v1430_v39 }
 0xffc   :  { %v1355_v45 = vpop.f32.mrf.mxu2 }
 0xffd   :  { %v1360_v6 = vadd.f32 %v1355_v45, %v1223_v44 }
0x1004   :  { %v1357_v21 = vpop.f32.mrf.mxu2 }
0x1005   :  { %v1361_v62 = vadd.f32 %v1357_v21, %v1225_v60  ;;  %v1931_v21 = vld [vmem:[%s2593_s6 + $0x68] sm:$0xff] }
0x1006   :  { %1655 = vmatpush.bf16.msrb.mxu1 %v1931_v21 }
0x105e   :  { %v1470_v49 = vpop.f32.mrf.mxu2 }
0x105f   :  { %v1449_v50 = vpop.f32.mrf.mxu1 }
0x1060   :  { %v1474_v51 = vpack.c.bf16 %v1470_v49, %v1449_v50  ;;  %v1930_v49 = vld [vmem:[%s2593_s6 + $0x60] sm:$0xff]  ;;  %v1929_v50 = vld [vmem:[%s2593_s6 + $0x58] sm:$0xff] }
0x1061   :  { %1656 = vmatpush.bf16.msrb.mxu1 %v1930_v49  ;;  %v1713_v49 = vperm.slane %v2521_v55, 4 }
0x1062   :  { %1868 = vmatmul.msk.bf16.vlgmr.msrb.gmra.mxu3 %vm122_vm1, %v1474_v51  ;;  %v1928_v51 = vld [vmem:[%s2593_s6 + $0x50] sm:$0xff] }
0x1065   :  { %1657 = vmatpush.bf16.msrb.mxu1 %v1929_v50 }
0x1066   :  { %v1472_v52 = vpop.f32.mrf.mxu2 }
0x1067   :  { %v1451_v54 = vpop.f32.mrf.mxu1  ;;  %v1927_v52 = vld [vmem:[%s2593_s6 + $0x48] sm:$0xff] }
0x1068   :  { %v1954_v54 = vld [vmem:[%s2596_s9 + $0x1] ss:$0 sm:$0xff] }
0x1069   :  { %1658 = vmatpush.bf16.msrb.mxu1 %v1928_v51 }
0x106d   :  { %1659 = vmatpush.bf16.msrb.mxu1 %v1927_v52 }
0x10e5   :  { %v1490_v56 = vpop.f32.mrf.mxu3 }
0x10e6   :  { %v1495_v57 = vadd.f32 %v1490_v56, %v1360_v6 }
0x10e8   :  { %v1497_v59 = vadd.f32 %v1495_v57, %v2376_v41  ;;  %v1926_v57 = vld [vmem:[%s2593_s6 + $0x40] sm:$0xff]  ;;  %s2085_s6 = smov [#allocation2]  }
0x10e9   :  { %1660 = vmatpush.bf16.msrb.mxu1 %v1926_v57  ;;  %s1725_s9 = sshll.u32 %s2085_s6, 4  ;;  %s1726_s9 = int_to_ptr.vmem [resolvable:$true] %s1725_s9 }
0x10ea   :  { %v1500_v61 = vadd.f32 %v1499_v58, %v1497_v59 }
0x10ec   :  { %v1502_v0 = vsel %vm91_vm0, %v1500_v61, 0.0 }
0x10ed   :  { %1503 = vadd.xlane.f32.xlu2 %v1502_v0  ;;  %v1492_v1 = vpop.f32.mrf.mxu3 }
0x10ee   :  { %v1496_v2 = vadd.f32 %v1492_v1, %v1361_v62 }
0x10f0   :  { %v1498_v3 = vadd.f32 %v1496_v2, %v2378_v43  ;;  %v1925_v43 = vld [vmem:[%s2592_s5 + $0x18] sm:$0xff] }
0x10f1   :  { %1577 = vmatpush.bf16.msrb.mxu0 %v1925_v43 }
0x10f2   :  { %v1501_v4 = vadd.f32 %v1499_v58, %v1498_v3 }
0x10f4   :  { %v1505_v7 = vsel %vm91_vm0, %v1501_v4, 0.0 }
0x10f5   :  { %1506 = vadd.xlane.f32.xlu0 %v1505_v7  ;;  %1578 = vmatpush.bf16.msrb.mxu0 %v1924_v11 }
0x1160   :  { %v1504_v8 = vpop.xlane.xlu2 %1503 }
0x1161   :  { %v1508_v9 = vmul.f32 %v1504_v8, %v2315_v40 }
0x1163   :  { %v1510_v10 = vsub.f32 %v1500_v61, %v1508_v9 }
0x1165   :  { %v1512_v41 = vmul.f32 %v1510_v10, %v1510_v10 }
0x1167   :  { %v1514_v63 = vsel %vm91_vm0, %v1512_v41, 0.0 }
0x1168   :  { %1515 = vadd.xlane.f32.xlu1 %v1514_v63  ;;  %v1507_v13 = vpop.xlane.xlu0 %1506 }
0x1169   :  { %v1509_v48 = vmul.f32 %v1507_v13, %v2315_v40 }
0x116b   :  { %v1511_v12 = vsub.f32 %v1501_v4, %v1509_v48 }
0x116d   :  { %v1513_v14 = vmul.f32 %v1511_v12, %v1511_v12 }
0x116f   :  { %v1517_v15 = vsel %vm91_vm0, %v1513_v14, 0.0 }
0x1170   :  { %1518 = vadd.xlane.f32.xlu0 %v1517_v15 }
0x11db   :  { %v1516_v16 = vpop.xlane.xlu1 %1515 }
0x11dc   :  { %v1520_v33 = vmul.f32 %v1516_v16, %v2315_v40  ;;  %v1604_v16 = vperm.slane %v2521_v55, 3 }
0x11de   :  { %v1522_v17 = vadd.f32 1e-05, %v1520_v33 }
0x11e0   :  { %2033 = vrsqrt.f32 %v1522_v17  ;;  %vm1530_vm2 = vweird.f32 %v1522_v17 }
0x11e3   :  { %v1519_v19 = vpop.xlane.xlu0 %1518 }
0x11e4   :  { %v1521_v20 = vmul.f32 %v1519_v19, %v2315_v40 }
0x11e6   :  { %v2034_v22 = vpop.eup %2033  ;;  %v1523_v23 = vadd.f32 1e-05, %v1521_v20 }
0x11e7   :  { %v1525_v24 = vmul.f32 %v2034_v22, %v1522_v17  ;;  %vm1531_vm1 = vweird.f32 %v2034_v22 }
0x11e8   :  { %2035 = vrsqrt.f32 %v1523_v23  ;;  %vm1532_vm3 = vmor %vm1530_vm2, %vm1531_vm1  ;;  %vm1540_vm5 = vweird.f32 %v1523_v23 }
0x11e9   :  { %v1526_v25 = vmul.f32 %v2034_v22, %v1525_v24 }
0x11eb   :  { %v1527_v26 = vmul.f32 0.5, %v1526_v25 }
0x11ed   :  { %v1528_v27 = vsub.f32 1.5, %v1527_v26 }
0x11ee   :  { %v2036_v28 = vpop.eup %2035 }
0x11ef   :  { %v1529_v29 = vmul.f32 %v2034_v22, %v1528_v27  ;;  %v1535_v30 = vmul.f32 %v2036_v28, %v1523_v23  ;;  %vm1541_vm4 = vweird.f32 %v2036_v28 }
0x11f0   :  { %vm1542_vm6 = vmor %vm1540_vm5, %vm1541_vm4 }
0x11f1   :  { %v1536_v18 = vmul.f32 %v2036_v28, %v1535_v30  ;;  %v1533_v31 = vsel %vm1532_vm3, %v2034_v22, %v1529_v29 }
0x11f2   :  { %v1544_v36 = vmul.f32 %v1533_v31, %v1510_v10 }
0x11f3   :  { %v1537_v32 = vmul.f32 0.5, %v1536_v18 }
0x11f4   :  { %v1547_v5 = vmul.f32 %v1546_v35, %v1544_v36 }
0x11f5   :  { %v1538_v34 = vsub.f32 1.5, %v1537_v32 }
0x11f6   :  { %v1550_v44 = vadd.f32 %v1549_v42, %v1547_v5 }
0x11f7   :  { %v1539_v37 = vmul.f32 %v2036_v28, %v1538_v34 }
0x11f9   :  { %v1543_v38 = vsel %vm1542_vm6, %v2036_v28, %v1539_v37 }
0x11fa   :  { %v1545_v53 = vmul.f32 %v1543_v38, %v1511_v12 }
0x11fc   :  { %v1548_v39 = vmul.f32 %v1546_v35, %v1545_v53 }
0x11fe   :  { %v1551_v45 = vadd.f32 %v1549_v42, %v1548_v39 }
0x1200   :  { %v1552_v6 = vpack.c.bf16 %v1551_v45, %v1550_v44 }
0x1202   :  { %1877 = vmatmul.msk.bf16.vlgmr.msrb.gmra.mxu0 %vm91_vm0, %v1552_v6 }
0x127f   :  { %v1580_v56 = vpop.f32.mrf.mxu0 }
0x1280   :  { %v1581_v58 = vadd.f32 %v1954_v54, %v1580_v56 }
0x1282   :  { %v1585_v59 = vmul.f32 %v1581_v58, %v1581_v58 }
0x1284   :  { %v1587_v60 = vmul.f32 %v1585_v59, %v1581_v58 }
0x1286   :  { %v1589_v61 = vmul.f32 0.044715, %v1587_v60 }
0x1287   :  { %v1582_v62 = vpop.f32.mrf.mxu0 }
0x1288   :  { %v1591_v0 = vadd.f32 %v1589_v61, %v1581_v58  ;;  %v1583_v1 = vadd.f32 %v1954_v54, %v1582_v62 }
0x128a   :  { %v1593_v2 = vmul.f32 0.7978846, %v1591_v0  ;;  %v1586_v3 = vmul.f32 %v1583_v1, %v1583_v1 }
0x128c   :  { %v1588_v4 = vmul.f32 %v1586_v3, %v1583_v1  ;;  %2037 = vtanh.f32 %v1593_v2 }
0x128e   :  { %v1590_v7 = vmul.f32 0.044715, %v1588_v4 }
0x1290   :  { %v1592_v8 = vadd.f32 %v1590_v7, %v1583_v1 }
0x1292   :  { %v1594_v9 = vmul.f32 0.7978846, %v1592_v8  ;;  %v2038_v10 = vpop.eup %2037 }
0x1293   :  { %v1597_v41 = vadd.f32 1.0, %v2038_v10 }
0x1294   :  { %2039 = vtanh.f32 %v1594_v9 }
0x1295   :  { %v1599_v13 = vmul.f32 0.5, %v1597_v41 }
0x1297   :  { %v1601_v14 = vmul.f32 %v1599_v13, %v1581_v58 }
0x129a   :  { %v2040_v63 = vpop.eup %2039 }
0x129b   :  { %v1598_v48 = vadd.f32 1.0, %v2040_v63 }
0x129d   :  { %v1600_v12 = vmul.f32 0.5, %v1598_v48 }
0x129f   :  { %v1602_v15 = vmul.f32 %v1600_v12, %v1583_v1 }
0x12a1   :  { %v1603_v43 = vpack.c.bf16 %v1602_v15, %v1601_v14 }
0x12a3   :  { %1661 = vmatmul.bf16.vlgmr.msrb.gmra.mxu1 %v1603_v43 }
0x1320   :  { %v1662_v33 = vpop.f32.mrf.mxu1 }
0x1321   :  { %v1663_v17 = vadd.f32 %v1662_v33, %v1604_v16 }
0x1323   :  { %v1667_v11 = vadd.f32 %v1663_v17, %v1550_v44 }
0x1325   :  { %v1669_v19 = vsel %vm91_vm0, %v1667_v11, 0.0 }
0x1326   :  { %1670 = vadd.xlane.f32.xlu0 %v1669_v19 }
0x1328   :  { %v1664_v20 = vpop.f32.mrf.mxu1 }
0x1329   :  { %v1665_v22 = vadd.f32 %v1664_v20, %v1604_v16 }
0x132b   :  { %v1668_v23 = vadd.f32 %v1665_v22, %v1551_v45 }
0x132d   :  { %v1672_v24 = vsel %vm91_vm0, %v1668_v23, 0.0 }
0x132e   :  { %1673 = vadd.xlane.f32.xlu0 %v1672_v24 }
0x1399   :  { %v1671_v25 = vpop.xlane.xlu0 %1670 }
0x139a   :  { %v1675_v26 = vmul.f32 %v1671_v25, %v2315_v40 }
0x139c   :  { %v1677_v27 = vsub.f32 %v1667_v11, %v1675_v26 }
0x139e   :  { %v1679_v28 = vmul.f32 %v1677_v27, %v1677_v27 }
0x13a0   :  { %v1681_v29 = vsel %vm91_vm0, %v1679_v28, 0.0 }
0x13a1   :  { %1682 = vadd.xlane.f32.xlu2 %v1681_v29  ;;  %v1674_v30 = vpop.xlane.xlu0 %1673 }
0x13a2   :  { %v1676_v18 = vmul.f32 %v1674_v30, %v2315_v40 }
0x13a4   :  { %v1678_v31 = vsub.f32 %v1668_v23, %v1676_v18 }
0x13a6   :  { %v1680_v32 = vmul.f32 %v1678_v31, %v1678_v31 }
0x13a8   :  { %v1684_v34 = vsel %vm91_vm0, %v1680_v32, 0.0 }
0x13a9   :  { %1685 = vadd.xlane.f32.xlu0 %v1684_v34 }
0x1414   :  { %v1683_v35 = vpop.xlane.xlu2 %1682 }
0x1415   :  { %v1687_v36 = vmul.f32 %v1683_v35, %v2315_v40 }
0x1417   :  { %v1689_v37 = vadd.f32 1e-05, %v1687_v36 }
0x1419   :  { %2041 = vrsqrt.f32 %v1689_v37  ;;  %vm1697_vm8 = vweird.f32 %v1689_v37 }
0x141c   :  { %v1686_v38 = vpop.xlane.xlu0 %1685 }
0x141d   :  { %v1688_v42 = vmul.f32 %v1686_v38, %v2315_v40  ;;  %v1716_v40 = vperm.slane %v2521_v55, 5 }
0x141f   :  { %v2042_v5 = vpop.eup %2041  ;;  %v1690_v53 = vadd.f32 1e-05, %v1688_v42 }
0x1420   :  { %v1692_v39 = vmul.f32 %v2042_v5, %v1689_v37  ;;  %vm1698_vm7 = vweird.f32 %v2042_v5 }
0x1421   :  { %2043 = vrsqrt.f32 %v1690_v53  ;;  %vm1699_vm9 = vmor %vm1697_vm8, %vm1698_vm7  ;;  %vm1707_vm11 = vweird.f32 %v1690_v53 }
0x1422   :  { %v1693_v44 = vmul.f32 %v2042_v5, %v1692_v39 }
0x1424   :  { %v1694_v45 = vmul.f32 0.5, %v1693_v44 }
0x1426   :  { %v1695_v6 = vsub.f32 1.5, %v1694_v45 }
0x1427   :  { %v2044_v46 = vpop.eup %2043 }
0x1428   :  { %v1696_v47 = vmul.f32 %v2042_v5, %v1695_v6  ;;  %v1702_v21 = vmul.f32 %v2044_v46, %v1690_v53  ;;  %vm1708_vm10 = vweird.f32 %v2044_v46 }
0x1429   :  { %vm1709_vm12 = vmor %vm1707_vm11, %vm1708_vm10 }
0x142a   :  { %v1700_v50 = vsel %vm1699_vm9, %v2042_v5, %v1696_v47  ;;  %v1703_v51 = vmul.f32 %v2044_v46, %v1702_v21 }
0x142b   :  { %v1711_v52 = vmul.f32 %v1700_v50, %v1677_v27 }
0x142c   :  { %v1704_v54 = vmul.f32 0.5, %v1703_v51 }
0x142d   :  { %v1714_v56 = vmul.f32 %v1713_v49, %v1711_v52 }
0x142e   :  { %v1705_v57 = vsub.f32 1.5, %v1704_v54 }
0x142f   :  { %v1717_v58 = vadd.f32 %v1716_v40, %v1714_v56 }
0x1430   :  { %v1706_v59 = vmul.f32 %v2044_v46, %v1705_v57 }
0x1431   :  { %1719 = vst.msk [vmem:[#allocation2] sm:$0xff] %vm91_vm0, %v1717_v58 }
0x1432   :  { %v1710_v60 = vsel %vm1709_vm12, %v2044_v46, %v1706_v59 }
0x1433   :  { %v1712_v61 = vmul.f32 %v1710_v60, %v1678_v31 }
0x1435   :  { %v1715_v62 = vmul.f32 %v1713_v49, %v1712_v61 }
0x1437   :  { %v1718_v55 = vadd.f32 %v1716_v40, %v1715_v62 }
0x1439   :  { %1720 = vst.msk [vmem:[#allocation2 + $0x8] sm:$0xff] %vm91_vm0, %v1718_v55 }
0x143a   :  { %1733 = dma.vmem_to_hbm [thread:$0]  %s1726_s9, 256, %s1728_s15, [#allocation3], %s2086_s20, %s2086_s20, %s2087_s21  }
0x143b   :  { %2071 = dma.done.wait [#allocation3], 256  }
0x143c   :  { %2072 = vsyncadd [#allocation3], 4294967040 }
0x143d   :  { %1738 = vsyncpa [#allocation3], 1 }

</bundles_post_ra>
